<compile_context>
chip_gen: v6e
topology: v6e:2x2x1
jax: 0.10.0
libtpu: 0.0.40
codegen_flags: <defaults>
</compile_context>

<pallas_src>
import functools

import jax
import jax.numpy as jnp
from jax import lax
from jax.experimental import pallas as pl
from jax.experimental.pallas import tpu as pltpu


def _shift_rows(y, s):
    """Zero-filled shift along axis 0 of a 2-D value: out[p] = y[p + s] (else 0)."""
    if s == 0:
        return y
    p, c = y.shape
    z = jnp.zeros((abs(s), c), y.dtype)
    if s > 0:
        return jnp.concatenate([y[s:, :], z], axis=0)
    return jnp.concatenate([z, y[:p + s, :]], axis=0)


def _shift_cols(x, d):
    """Zero-filled shift along axis 1 of a 3-D value: out[:, w] = x[:, w + d] (else 0)."""
    if d == 0:
        return x
    h, w, c = x.shape
    z = jnp.zeros((h, abs(d), c), x.dtype)
    if d > 0:
        return jnp.concatenate([x[:, d:, :], z], axis=1)
    return jnp.concatenate([z, x[:, :w + d, :]], axis=1)


def _gep_kernel(x_ref, wf_ref, o_ref, *, K, PAD, relu):
    # x_ref : (1, H, W, Cin)    one batch element (NHWC), bf16
    # wf_ref: (K*K*Cin, Cout)   host-fused conv weights, bf16
    #                           row index = (kh*K + kw)*Cin + cin
    # o_ref : (1, H, W, Cout)   f32
    _, H, W, Cin = x_ref.shape
    Cout = o_ref.shape[-1]
    P = H * W

    x3 = x_ref[0]                     # (H, W, Cin) bf16
    wf = wf_ref[...]                  # hoisted once per invocation

    acc = jnp.zeros((P, Cout), jnp.float32)
    for kw in range(K):                               # static unroll
        dw = kw - PAD
        # width shift with zero fill (replaces the old mask input / iota mask)
        x_w = _shift_cols(x3, dw).reshape(P, Cin)
        for kh in range(K):
            dh = kh - PAD
            tap = _shift_rows(x_w, dh * W)            # aligned flat row shift
            t = kh * K + kw
            acc = acc + jnp.dot(tap, wf[t * Cin:(t + 1) * Cin, :],
                                preferred_element_type=jnp.float32)

    if relu:
        acc = jnp.maximum(acc, 0.0)
    o_ref[0] = acc.reshape(H, W, Cout).astype(o_ref.dtype)


def gep_forward(x_nhwc, wfused, *, K, relu=False, out_dtype=jnp.float32):
    """x_nhwc: (B, H, W, Cin) bf16; wfused: (K*K*Cin, Cout) bf16."""
    B, H, W, Cin = x_nhwc.shape
    KKC, Cout = wfused.shape
    PAD = K // 2
    assert K % 2 == 1, "only odd K keeps output size with padding=K//2"
    assert KKC == K * K * Cin
    assert PAD < H and PAD < W
    P = H * W

    # ---- VMEM budget guard (sized for v7x's 64 MiB per-TC VMEM) ----
    def _pad_to(n, m):
        return ((n + m - 1) // m) * m

    x_blk = P * _pad_to(Cin, 128) * 2                  # bf16 block, lane padded
    o_blk = P * _pad_to(Cout, 128) * 4                 # f32 block, lane padded
    w_blk = _pad_to(KKC, 16) * _pad_to(Cout, 128) * 2
    live = (K + 2) * P * _pad_to(Cin, 128) * 2 + 2 * P * _pad_to(Cout, 128) * 4
    vmem_est = 2 * (x_blk + o_blk + w_blk) + live      # 2x for double buffering
    vmem_budget = 48 * 1024 * 1024
    # TODO(synk): replace this guard with spatial strip tiling + halo so
    #             arbitrarily large images fit and both v7x TCs get work.
    assert vmem_est <= vmem_budget, (
        f"image too large for single-block kernel (~{vmem_est >> 20} MiB VMEM);"
        " spatial strip tiling not implemented yet")

    flops = 2 * B * P * K * K * Cin * Cout
    bytes_accessed = (x_nhwc.size * x_nhwc.dtype.itemsize
                      + B * P * Cout * jnp.dtype(out_dtype).itemsize
                      + wfused.size * wfused.dtype.itemsize)

    kernel = functools.partial(_gep_kernel, K=K, PAD=PAD, relu=relu)

    return pl.pallas_call(
        kernel,
        out_shape=jax.ShapeDtypeStruct((B, H, W, Cout), out_dtype),
        grid_spec=pltpu.PrefetchScalarGridSpec(
            num_scalar_prefetch=0,
            grid=(B,),
            in_specs=[
                pl.BlockSpec((1, H, W, Cin), lambda b: (b, 0, 0, 0)),
                pl.BlockSpec((KKC, Cout), lambda b: (0, 0)),
            ],
            out_specs=pl.BlockSpec((1, H, W, Cout), lambda b: (b, 0, 0, 0)),
        ),
        compiler_params=pltpu.CompilerParams(
            dimension_semantics=("parallel",),
            vmem_limit_bytes=vmem_budget),
        cost_estimate=pl.CostEstimate(
            flops=int(flops), transcendentals=0,
            bytes_accessed=int(bytes_accessed)),
    )(x_nhwc, wfused)


def _fuse_weights(pw_weight, dw_weight):
    """(R,Cout,Cin,1,1),(R,Cout,1,K,K) -> (K*K*Cin, Cout); row = (kh*K+kw)*Cin+cin."""
    _, Cout, Cin = pw_weight.shape[:3]
    K = dw_weight.shape[-1]
    # wf[kh, kw, cin, c] = sum_r pw[r, c, cin] * dw[r, c, kh, kw]   (f32 fusion)
    wf = jnp.einsum('rci,rchw->hwic', pw_weight[:, :, :, 0, 0],
                    dw_weight[:, :, 0, :, :])
    return wf.reshape(K * K * Cin, Cout)


def gep_forward_nchw(x_nchw, pw_weight, dw_weight, *, relu=False):
    """PyTorch-convention entry point.

    x_nchw   : (B, Cin, H, W)
    pw_weight: (R, Cout, Cin, 1, 1)   -- stacked pw{i}.weight
    dw_weight: (R, Cout, 1, K, K)     -- stacked dw{i}.weight
    returns  : (B, Cout, H, W)
    """
    _, _, Cin, _, _ = pw_weight.shape
    K = dw_weight.shape[-1]
    assert K % 2 == 1, "even K changes output size in PyTorch (padding=K//2)"
    assert x_nchw.shape[1] == Cin
    x_nhwc = jnp.transpose(x_nchw, (0, 2, 3, 1)).astype(jnp.bfloat16)  # cast in wrapper
    wfused = _fuse_weights(pw_weight, dw_weight).astype(jnp.bfloat16)
    out_nhwc = gep_forward(x_nhwc, wfused, K=K, relu=relu, out_dtype=x_nchw.dtype)
    return jnp.transpose(out_nhwc, (0, 3, 1, 2))


# ----------------------------- references --------------------------------- #

def _reference_nchw(x_nchw, pw_weight, dw_weight, *, relu=False):
    """Pure-JAX f32 reference with PyTorch conv semantics (NCHW / OIHW)."""
    R, Cout = pw_weight.shape[:2]
    K = dw_weight.shape[-1]
    PAD = K // 2
    dn = ("NCHW", "OIHW", "NCHW")
    out = None
    for r in range(R):
        y = lax.conv_general_dilated(x_nchw, pw_weight[r], (1, 1), "VALID",
                                     dimension_numbers=dn,
                                     precision=lax.Precision.HIGHEST)
        o = lax.conv_general_dilated(y, dw_weight[r], (1, 1),
                                     [(PAD, PAD), (PAD, PAD)],
                                     feature_group_count=Cout,
                                     dimension_numbers=dn,
                                     precision=lax.Precision.HIGHEST)
        out = o if out is None else out + o
    if relu:
        out = jnp.maximum(out, 0.0)
    return out


def _reference_nchw_matched(x_nchw, pw_weight, dw_weight, *, relu=False):
    """Mirrors the kernel numerics: bf16 x / bf16 fused weights, f32 accumulation."""
    Cout, Cin = pw_weight.shape[1], pw_weight.shape[2]
    K = dw_weight.shape[-1]
    PAD = K // 2
    x = jnp.transpose(x_nchw, (0, 2, 3, 1)).astype(jnp.bfloat16).astype(jnp.float32)
    wf = _fuse_weights(pw_weight, dw_weight).astype(jnp.bfloat16).astype(jnp.float32)
    wf = wf.reshape(K, K, Cin, Cout)
    B, H, W, _ = x.shape
    xp = jnp.pad(x, ((0, 0), (PAD, PAD), (PAD, PAD), (0, 0)))
    acc = jnp.zeros((B, H, W, Cout), jnp.float32)
    for kh in range(K):
        for kw in range(K):
            tap = xp[:, kh:kh + H, kw:kw + W, :]
            acc = acc + jnp.einsum('bhwi,ic->bhwc', tap, wf[kh, kw],
                                   precision=lax.Precision.HIGHEST)
    if relu:
        acc = jnp.maximum(acc, 0.0)
    return jnp.transpose(acc, (0, 3, 1, 2))


if __name__ == "__main__":
    key = jax.random.PRNGKey(0)
    B, Cin, H, W = 2, 4, 16, 16
    Cout, K = 4, 3

    for rank, relu in ((1, False), (2, False), (2, True)):
        k1, k2, k3, key = jax.random.split(key, 4)
        x = jax.random.normal(k1, (B, Cin, H, W), jnp.float32)
        pw_w = jax.random.normal(k2, (rank, Cout, Cin, 1, 1), jnp.float32) * 0.1
        dw_w = jax.random.normal(k3, (rank, Cout, 1, K, K), jnp.float32) * 0.1

        out = jax.block_until_ready(gep_forward_nchw(x, pw_w, dw_w, relu=relu))
        assert out.shape == (B, Cout, H, W)

        # Tight check against a reference with matched (bf16 fused) numerics.
        ref_m = _reference_nchw_matched(x, pw_w, dw_w, relu=relu)
        err_m = float(jnp.max(jnp.abs(out - ref_m)))
        assert err_m < 1e-3, f"rank={rank} relu={relu} matched-ref max err {err_m}"

        # Loose check against the pure-f32 PyTorch-semantics reference.
        ref_f = _reference_nchw(x, pw_w, dw_w, relu=relu)
        err_f = float(jnp.max(jnp.abs(out - ref_f)))
        assert err_f < 2e-2, f"rank={rank} relu={relu} f32-ref max err {err_f}"

    print("KERNEL_OK")
</pallas_src>

<mosaic_0001>
module attributes {stable_mosaic.version = 11 : i64} {
  func.func @_gep_kernel(%arg0: i32, %arg1: memref<1x16x16x4xbf16, #tpu.memory_space<vmem>>, %arg2: memref<36x4xbf16, #tpu.memory_space<vmem>>, %arg3: memref<1x16x16x4xf32, #tpu.memory_space<vmem>>) attributes {dimension_semantics = [#tpu.dimension_semantics<parallel>], iteration_bounds = array<i64: 2>, scalar_prefetch = 0 : i64, scratch_operands = 0 : i64, tpu.core_type = #tpu.core_type<tc>, window_params = [{transform_indices = @transform_0, window_bounds = array<i64: 1, 16, 16, 4>}, {pipeline_mode = #tpu.pipeline_mode<synchronous>, transform_indices = @transform_1, window_bounds = array<i64: 36, 4>}, {transform_indices = @transform_2, window_bounds = array<i64: 1, 16, 16, 4>}]} {
    %c0 = arith.constant 0 : index
    %c0_0 = arith.constant 0 : index
    %c0_1 = arith.constant 0 : index
    %c0_2 = arith.constant 0 : index
    %0 = vector.load %arg1[%c0, %c0_0, %c0_1, %c0_2] : memref<1x16x16x4xbf16, #tpu.memory_space<vmem>>, vector<1x16x16x4xbf16>
    %1 = vector.shape_cast %0 : vector<1x16x16x4xbf16> to vector<16x16x4xbf16>
    %c0_3 = arith.constant 0 : index
    %c0_4 = arith.constant 0 : index
    %2 = vector.load %arg2[%c0_3, %c0_4] : memref<36x4xbf16, #tpu.memory_space<vmem>>, vector<36x4xbf16>
    %cst = arith.constant 0.000000e+00 : f32
    %3 = vector.broadcast %cst : f32 to vector<256x4xf32>
    %cst_5 = arith.constant 0.000000e+00 : bf16
    %4 = vector.broadcast %cst_5 : bf16 to vector<16x1x4xbf16>
    %5 = vector.extract_strided_slice %1 {offsets = [0, 0, 0], sizes = [16, 15, 4], strides = [1, 1, 1]} : vector<16x16x4xbf16> to vector<16x15x4xbf16>
    %6 = tpu.concatenate %4, %5 in 1 : vector<16x1x4xbf16>, vector<16x15x4xbf16> -> vector<16x16x4xbf16>
    %7 = vector.shape_cast %6 : vector<16x16x4xbf16> to vector<256x4xbf16>
    %cst_6 = arith.constant 0.000000e+00 : bf16
    %8 = vector.broadcast %cst_6 : bf16 to vector<16x4xbf16>
    %9 = vector.extract_strided_slice %7 {offsets = [0, 0], sizes = [240, 4], strides = [1, 1]} : vector<256x4xbf16> to vector<240x4xbf16>
    %10 = tpu.concatenate %8, %9 in 0 : vector<16x4xbf16>, vector<240x4xbf16> -> vector<256x4xbf16>
    %11 = vector.extract_strided_slice %2 {offsets = [0, 0], sizes = [4, 4], strides = [1, 1]} : vector<36x4xbf16> to vector<4x4xbf16>
    %cst_7 = arith.constant dense<0.000000e+00> : vector<256x4xf32>
    %12 = tpu.matmul %10, %11, %cst_7 {dimension_numbers = #tpu.dot_dimension_numbers<[1], [0], [0], [1], [0, 0, 1, 1], [], []>} : vector<256x4xbf16>, vector<4x4xbf16>, vector<256x4xf32> -> vector<256x4xf32>
    %13 = arith.addf %3, %12 : vector<256x4xf32>
    %14 = vector.extract_strided_slice %2 {offsets = [12, 0], sizes = [4, 4], strides = [1, 1]} : vector<36x4xbf16> to vector<4x4xbf16>
    %cst_8 = arith.constant dense<0.000000e+00> : vector<256x4xf32>
    %15 = tpu.matmul %7, %14, %cst_8 {dimension_numbers = #tpu.dot_dimension_numbers<[1], [0], [0], [1], [0, 0, 1, 1], [], []>} : vector<256x4xbf16>, vector<4x4xbf16>, vector<256x4xf32> -> vector<256x4xf32>
    %16 = arith.addf %13, %15 : vector<256x4xf32>
    %cst_9 = arith.constant 0.000000e+00 : bf16
    %17 = vector.broadcast %cst_9 : bf16 to vector<16x4xbf16>
    %18 = vector.extract_strided_slice %7 {offsets = [16, 0], sizes = [240, 4], strides = [1, 1]} : vector<256x4xbf16> to vector<240x4xbf16>
    %19 = tpu.concatenate %18, %17 in 0 : vector<240x4xbf16>, vector<16x4xbf16> -> vector<256x4xbf16>
    %20 = vector.extract_strided_slice %2 {offsets = [24, 0], sizes = [4, 4], strides = [1, 1]} : vector<36x4xbf16> to vector<4x4xbf16>
    %cst_10 = arith.constant dense<0.000000e+00> : vector<256x4xf32>
    %21 = tpu.matmul %19, %20, %cst_10 {dimension_numbers = #tpu.dot_dimension_numbers<[1], [0], [0], [1], [0, 0, 1, 1], [], []>} : vector<256x4xbf16>, vector<4x4xbf16>, vector<256x4xf32> -> vector<256x4xf32>
    %22 = arith.addf %16, %21 : vector<256x4xf32>
    %23 = vector.shape_cast %1 : vector<16x16x4xbf16> to vector<256x4xbf16>
    %cst_11 = arith.constant 0.000000e+00 : bf16
    %24 = vector.broadcast %cst_11 : bf16 to vector<16x4xbf16>
    %25 = vector.extract_strided_slice %23 {offsets = [0, 0], sizes = [240, 4], strides = [1, 1]} : vector<256x4xbf16> to vector<240x4xbf16>
    %26 = tpu.concatenate %24, %25 in 0 : vector<16x4xbf16>, vector<240x4xbf16> -> vector<256x4xbf16>
    %27 = vector.extract_strided_slice %2 {offsets = [4, 0], sizes = [4, 4], strides = [1, 1]} : vector<36x4xbf16> to vector<4x4xbf16>
    %cst_12 = arith.constant dense<0.000000e+00> : vector<256x4xf32>
    %28 = tpu.matmul %26, %27, %cst_12 {dimension_numbers = #tpu.dot_dimension_numbers<[1], [0], [0], [1], [0, 0, 1, 1], [], []>} : vector<256x4xbf16>, vector<4x4xbf16>, vector<256x4xf32> -> vector<256x4xf32>
    %29 = arith.addf %22, %28 : vector<256x4xf32>
    %30 = vector.extract_strided_slice %2 {offsets = [16, 0], sizes = [4, 4], strides = [1, 1]} : vector<36x4xbf16> to vector<4x4xbf16>
    %cst_13 = arith.constant dense<0.000000e+00> : vector<256x4xf32>
    %31 = tpu.matmul %23, %30, %cst_13 {dimension_numbers = #tpu.dot_dimension_numbers<[1], [0], [0], [1], [0, 0, 1, 1], [], []>} : vector<256x4xbf16>, vector<4x4xbf16>, vector<256x4xf32> -> vector<256x4xf32>
    %32 = arith.addf %29, %31 : vector<256x4xf32>
    %cst_14 = arith.constant 0.000000e+00 : bf16
    %33 = vector.broadcast %cst_14 : bf16 to vector<16x4xbf16>
    %34 = vector.extract_strided_slice %23 {offsets = [16, 0], sizes = [240, 4], strides = [1, 1]} : vector<256x4xbf16> to vector<240x4xbf16>
    %35 = tpu.concatenate %34, %33 in 0 : vector<240x4xbf16>, vector<16x4xbf16> -> vector<256x4xbf16>
    %36 = vector.extract_strided_slice %2 {offsets = [28, 0], sizes = [4, 4], strides = [1, 1]} : vector<36x4xbf16> to vector<4x4xbf16>
    %cst_15 = arith.constant dense<0.000000e+00> : vector<256x4xf32>
    %37 = tpu.matmul %35, %36, %cst_15 {dimension_numbers = #tpu.dot_dimension_numbers<[1], [0], [0], [1], [0, 0, 1, 1], [], []>} : vector<256x4xbf16>, vector<4x4xbf16>, vector<256x4xf32> -> vector<256x4xf32>
    %38 = arith.addf %32, %37 : vector<256x4xf32>
    %cst_16 = arith.constant 0.000000e+00 : bf16
    %39 = vector.broadcast %cst_16 : bf16 to vector<16x1x4xbf16>
    %40 = vector.extract_strided_slice %1 {offsets = [0, 1, 0], sizes = [16, 15, 4], strides = [1, 1, 1]} : vector<16x16x4xbf16> to vector<16x15x4xbf16>
    %41 = tpu.concatenate %40, %39 in 1 : vector<16x15x4xbf16>, vector<16x1x4xbf16> -> vector<16x16x4xbf16>
    %42 = vector.shape_cast %41 : vector<16x16x4xbf16> to vector<256x4xbf16>
    %cst_17 = arith.constant 0.000000e+00 : bf16
    %43 = vector.broadcast %cst_17 : bf16 to vector<16x4xbf16>
    %44 = vector.extract_strided_slice %42 {offsets = [0, 0], sizes = [240, 4], strides = [1, 1]} : vector<256x4xbf16> to vector<240x4xbf16>
    %45 = tpu.concatenate %43, %44 in 0 : vector<16x4xbf16>, vector<240x4xbf16> -> vector<256x4xbf16>
    %46 = vector.extract_strided_slice %2 {offsets = [8, 0], sizes = [4, 4], strides = [1, 1]} : vector<36x4xbf16> to vector<4x4xbf16>
    %cst_18 = arith.constant dense<0.000000e+00> : vector<256x4xf32>
    %47 = tpu.matmul %45, %46, %cst_18 {dimension_numbers = #tpu.dot_dimension_numbers<[1], [0], [0], [1], [0, 0, 1, 1], [], []>} : vector<256x4xbf16>, vector<4x4xbf16>, vector<256x4xf32> -> vector<256x4xf32>
    %48 = arith.addf %38, %47 : vector<256x4xf32>
    %49 = vector.extract_strided_slice %2 {offsets = [20, 0], sizes = [4, 4], strides = [1, 1]} : vector<36x4xbf16> to vector<4x4xbf16>
    %cst_19 = arith.constant dense<0.000000e+00> : vector<256x4xf32>
    %50 = tpu.matmul %42, %49, %cst_19 {dimension_numbers = #tpu.dot_dimension_numbers<[1], [0], [0], [1], [0, 0, 1, 1], [], []>} : vector<256x4xbf16>, vector<4x4xbf16>, vector<256x4xf32> -> vector<256x4xf32>
    %51 = arith.addf %48, %50 : vector<256x4xf32>
    %cst_20 = arith.constant 0.000000e+00 : bf16
    %52 = vector.broadcast %cst_20 : bf16 to vector<16x4xbf16>
    %53 = vector.extract_strided_slice %42 {offsets = [16, 0], sizes = [240, 4], strides = [1, 1]} : vector<256x4xbf16> to vector<240x4xbf16>
    %54 = tpu.concatenate %53, %52 in 0 : vector<240x4xbf16>, vector<16x4xbf16> -> vector<256x4xbf16>
    %55 = vector.extract_strided_slice %2 {offsets = [32, 0], sizes = [4, 4], strides = [1, 1]} : vector<36x4xbf16> to vector<4x4xbf16>
    %cst_21 = arith.constant dense<0.000000e+00> : vector<256x4xf32>
    %56 = tpu.matmul %54, %55, %cst_21 {dimension_numbers = #tpu.dot_dimension_numbers<[1], [0], [0], [1], [0, 0, 1, 1], [], []>} : vector<256x4xbf16>, vector<4x4xbf16>, vector<256x4xf32> -> vector<256x4xf32>
    %57 = arith.addf %51, %56 : vector<256x4xf32>
    %58 = vector.shape_cast %57 : vector<256x4xf32> to vector<16x16x4xf32>
    %c0_22 = arith.constant 0 : index
    %c0_23 = arith.constant 0 : index
    %c0_24 = arith.constant 0 : index
    %c0_25 = arith.constant 0 : index
    %59 = vector.load %arg3[%c0_22, %c0_23, %c0_24, %c0_25] : memref<1x16x16x4xf32, #tpu.memory_space<vmem>>, vector<1x16x16x4xf32>
    %60 = vector.shape_cast %59 : vector<1x16x16x4xf32> to vector<16x16x4xf32>
    %61 = vector.shape_cast %58 : vector<16x16x4xf32> to vector<1x16x16x4xf32>
    tpu.vector_store %arg3[%c0_22, %c0_23, %c0_24, %c0_25], %61 {strides = array<i32>} : memref<1x16x16x4xf32, #tpu.memory_space<vmem>>, vector<1x16x16x4xf32>,
    return
  }
  func.func @transform_0(%arg0: i32) -> (i32, i32, i32, i32) {
    %c0_i32 = arith.constant 0 : i32
    %c0_i32_0 = arith.constant 0 : i32
    %c0_i32_1 = arith.constant 0 : i32
    %c0_i32_2 = arith.constant 0 : i32
    return %arg0, %c0_i32, %c0_i32_0, %c0_i32_1 : i32, i32, i32, i32
  }
  func.func @transform_1(%arg0: i32) -> (i32, i32) {
    %c0_i32 = arith.constant 0 : i32
    %c0_i32_0 = arith.constant 0 : i32
    %c0_i32_1 = arith.constant 0 : i32
    return %c0_i32, %c0_i32_0 : i32, i32
  }
  func.func @transform_2(%arg0: i32) -> (i32, i32, i32, i32) {
    %c0_i32 = arith.constant 0 : i32
    %c0_i32_0 = arith.constant 0 : i32
    %c0_i32_1 = arith.constant 0 : i32
    %c0_i32_2 = arith.constant 0 : i32
    return %arg0, %c0_i32, %c0_i32_0, %c0_i32_1 : i32, i32, i32, i32
  }
}

</mosaic_0001>

<bundles_post_ra>
// kernel: tpu_custom_call.1
= control target key start
LH: loop header
LB: loop body
LE: loop exit
PB: predicated region body
PF: predicated region fallthrough
CT: control target
= control target key end

     0   :  { %s3107_s9 = smov 0   ;;  %s4338_s0 = inlined_call_operand.vmem [shape: bf16[2,16,16,4], index: 0, kind: input, shape index: {}]   ;;  %s4339_s1 = inlined_call_operand.vmem [shape: bf16[36,4], index: 1, kind: input, shape index: {}]   ;;  %s4340_s2 = inlined_call_operand.vmem [shape: f32[2,16,16,4], index: 2, kind: output, shape index: {}]  }
   0x1 LB: > { %s2412_s10 = sadd.s32 4294967295, %s3089_s9   ;;  %p2416_p0 = scmp.ge.s32.totalorder %s3089_s9, 1  ;;  %s3089_s9 = sphi %s3107_s9, %s12_s9  }
   0x2   : > { %p112_p1 = scmp.lt.s32.totalorder %s3089_s9, 3 }
   0x4   : > { %p113_p2 = pnand %p2416_p0, %p112_p1 }
   0x6   : > { %116 = sbr.rel (%p113_p2) target bundleno = 510 (0x1fe), region = 28 }
   0xb   : > { %v3118_v0 = vld [vmem:[%s4339_s1 + $0x4] sm:$0xf]  ;;  %p134_p3 = scmp.lt.s32.totalorder %s2412_s10, 1  ;;  %vm462_vm0 = vcmask 1041408   ;;  %v177_v2 = vld [vmem:[%s4339_s1] sm:$0xf] }
   0xc   : > { %v2437_v1 = vcombine.low %v3118_v0, %v3118_v0  ;;  %v2484_v4 = vcombine.low %v177_v2, %v177_v2  ;;  %v3130_v5 = vld [vmem:[%s4339_s1 + $0xc] sm:$0xf]  ;;  %vm390_vm1 = vcmask 1040384   ;;  %vm391_vm2 = vsmask.f32 256 }
   0xd   : > { %s4446_s10 = smov (!%p134_p3, %s2412_s10), 1  ;;  %vm413_vm3 = vcmask 31744   ;;  %v631_v7 = vsel %vm462_vm0, %v177_v2, 0  ;;  %v795_v9 = vsel %vm462_vm0, %v3130_v5, 0  ;;  %vm3167_vm4 = vmand %vm390_vm1, %vm391_vm2  ;;  %v3217_v42 = vld [vmem:[%s4339_s1 + $0x8] sm:$0xf] }
   0xe   : > { %v412_v3 = vrot.slane %v2437_v1, 2  ;;  %s2581_s17 = sshll.u32 %s4446_s10, 7  ;;  %v3151_v11 = vrot.slane %v2484_v4, 2  ;;  %v1223_v20 = vsel %vm462_vm0, %v3217_v42, 0  ;;  %vm1666_vm5 = vcmask 1047552   ;;  %s2582_s25 = sshll.u32 %s4446_s10, 8 }
   0xf   : > { %s3139_s20 = scalar_lea.vmem %s4338_s0, %s2581_s17  ;;  %vm1667_vm6 = vsmask.f32 7424  ;;  %s4183_s28 = scalar_lea.vmem %s4340_s2, %s2582_s25 }
  0x10   : > { %3045 = vmatprep.subr.msk.bf16.mxu1 %vm462_vm0, %v412_v3  ;;  %3044 = vmatprep.subr.msk.bf16.mxu0 %vm462_vm0, %v412_v3  ;;  %v464_v6 = vsel %vm462_vm0, %v412_v3, 0  ;;  %v3143_v8 = vld [vmem:[%s3139_s20] sm:$0xff]   ;;  %v3160_v16 = vld [vmem:[%s3139_s20 + $0x8] sm:$0xff]   ;;  %v3180_v28 = vld [vmem:[%s3139_s20 + $0x10] sm:$0xff]  }
  0x11   : > { %3043 = vmatpush3.bf16.msra.mxu1 %v464_v6  ;;  %2737 = vmatpush3.bf16.msra.mxu0 %v464_v6  ;;  %v3148_v10 = vld [vmem:[%s3139_s20 + $0x40] sm:$0xff]   ;;  %v263_v12 = vshrl.u32 %v3143_v8, 16  ;;  %v266_v13 = vshll.u32 %v3143_v8, 16  ;;  %v3163_v17 = vld [vmem:[%s3139_s20 + $0x48] sm:$0xff]   ;;  %v270_v22 = vshrl.u32 %v3160_v16, 16  ;;  %v273_v23 = vshll.u32 %v3160_v16, 16  ;;  %vm3563_vm7 = vmand %vm1666_vm5, %vm1667_vm6 }
  0x12   : > { %3046 = vmatprep.subr.msk.bf16.mxu1 %vm462_vm0, %v177_v2  ;;  %3047 = vmatprep.subr.msk.bf16.mxu0 %vm462_vm0, %v3130_v5  ;;  %v319_v14 = vshrl.u32 %v3148_v10, 16  ;;  %v322_v15 = vshll.u32 %v3148_v10, 16  ;;  %v326_v24 = vshrl.u32 %v3163_v17, 16  ;;  %v329_v27 = vshll.u32 %v3163_v17, 16  ;;  %v3189_v32 = vld [vmem:[%s3139_s20 + $0x50] sm:$0xff]   ;;  %v3192_v33 = vld [vmem:[%s3139_s20 + $0x18] sm:$0xff]  }
  0x13   : > { %v265_v18 = vrot.slane %v263_v12, 7  ;;  %v1618_v19 = vrot.slane %v266_v13, 1  ;;  %v272_v30 = vrot.slane %v270_v22, 7  ;;  %v277_v35 = vshrl.u32 %v3180_v28, 16  ;;  %v3201_v37 = vld [vmem:[%s3139_s20 + $0x58] sm:$0xff]   ;;  %v3247_v54 = vld [vmem:[%s3139_s20 + $0x20] sm:$0xff]  }
  0x14   : > { %v321_v21 = vrot.slane %v319_v14, 7  ;;  %v328_v31 = vrot.slane %v326_v24, 7  ;;  %v280_v36 = vshll.u32 %v3180_v28, 16  ;;  %v4347_v41 = vshrl.u32 %v3189_v32, 16  ;;  %v3250_v55 = vld [vmem:[%s3139_s20 + $0x60] sm:$0xff]   ;;  %v3257_v58 = vld [vmem:[%s3139_s20 + $0x28] sm:$0xff]  }
  0x15   : > { %v268_v25 = vor.u32 %v266_v13, %v265_v18  ;;  %v3176_v26 = vor.u32 %v1618_v19, %v263_v12  ;;  %v275_v39 = vor.u32 %v273_v23, %v272_v30  ;;  %v279_v43 = vrot.slane %v277_v35, 7  ;;  %v3268_v63 = vld [vmem:[%s3139_s20 + $0x68] sm:$0xff]   ;;  %v3285_v6 = vld [vmem:[%s3139_s20 + $0x30] sm:$0xff]  }
  0x16   : > { %v324_v29 = vor.u32 %v322_v15, %v321_v21  ;;  %v331_v40 = vor.u32 %v329_v27, %v328_v31  ;;  %v336_v44 = vshll.u32 %v3189_v32, 16  ;;  %v284_v45 = vshrl.u32 %v3192_v33, 16 }
  0x17   : > { %v3196_v34 = vsel %vm3167_vm4, 0, %v268_v25  ;;  %v287_v46 = vshll.u32 %v3192_v33, 16  ;;  %v3228_v47 = vsel %vm3167_vm4, 0, %v275_v39  ;;  %v335_v49 = vrot.slane %v4347_v41, 7 }
  0x18   : > { %2738 = vmatprep.mubr.msk.bf16.mxu0 %vm413_vm3, %v3196_v34  ;;  %v3207_v38 = vsel %vm3167_vm4, 0, %v324_v29  ;;  %v3232_v48 = vsel %vm3167_vm4, 0, %v331_v40  ;;  %v4345_v50 = vshrl.u32 %v3201_v37, 16  ;;  %v282_v51 = vor.u32 %v280_v36, %v279_v43  ;;  %v3312_v40 = vld [vmem:[%s3139_s20 + $0x70] sm:$0xff]  }
  0x19   : > { %2754 = vmatprep.mubr.msk.bf16.mxu1 %vm413_vm3, %v3207_v38  ;;  %2739 = vmatmul.mubr.msk.bf16.vlgmr.msra.gmra.mxu0 %vm413_vm3, %v3228_v47  ;;  %v286_v52 = vrot.slane %v284_v45, 7  ;;  %v343_v53 = vshll.u32 %v3201_v37, 16  ;;  %v338_v56 = vor.u32 %v336_v44, %v335_v49  ;;  %v291_v61 = vshrl.u32 %v3247_v54, 16 }
  0x1a   : > { %2755 = vmatmul.mubr.msk.bf16.vlgmr.msra.gmra.mxu1 %vm413_vm3, %v3232_v48  ;;  %2805 = vmatpush3.bf16.msra.mxu0 %v795_v9  ;;  %v342_v57 = vrot.slane %v4345_v50, 7  ;;  %v3261_v59 = vsel %vm3167_vm4, 0, %v282_v51  ;;  %v294_v62 = vshll.u32 %v3247_v54, 16  ;;  %v4342_v3 = vshrl.u32 %v3250_v55, 16  ;;  %v3319_v51 = vld [vmem:[%s3139_s20 + $0x38] sm:$0xff]  }
  0x1b   : > { %2771 = vmatpush3.bf16.msra.mxu1 %v631_v7  ;;  %v289_v60 = vor.u32 %v287_v46, %v286_v52  ;;  %3049 = vmatprep.subr.msk.bf16.mxu0 %vm462_vm0, %v3217_v42  ;;  %v3278_v1 = vsel %vm3167_vm4, 0, %v338_v56  ;;  %v4343_v4 = vshll.u32 %v3250_v55, 16  ;;  %v293_v9 = vrot.slane %v291_v61, 7 }
  0x1c   : > { %3048 = vmatprep.subr.msk.bf16.mxu1 %vm462_vm0, %v3151_v11  ;;  %2742 = vmatprep.mubr.msk.bf16.mxu0 %vm413_vm3, %v3261_v59  ;;  %v345_v2 = vor.u32 %v343_v53, %v342_v57  ;;  %v298_v12 = vshrl.u32 %v3257_v58, 16  ;;  %v301_v13 = vshll.u32 %v3257_v58, 16  ;;  %v349_v19 = vrot.slane %v4342_v3, 7 }
  0x1d   : > { %2758 = vmatprep.mubr.msk.bf16.mxu1 %vm413_vm3, %v3278_v1  ;;  %v3291_v7 = vsel %vm3167_vm4, 0, %v289_v60  ;;  %v4341_v21 = vshrl.u32 %v3268_v63, 16  ;;  %v4344_v25 = vshll.u32 %v3268_v63, 16  ;;  %v296_v29 = vor.u32 %v294_v62, %v293_v9 }
  0x1e   : > { %v3299_v18 = vsel %vm3167_vm4, 0, %v345_v2  ;;  %v300_v30 = vrot.slane %v298_v12, 7  ;;  %v305_v31 = vshrl.u32 %v3285_v6, 16  ;;  %v308_v39 = vshll.u32 %v3285_v6, 16  ;;  %v3333_v2 = vld [vmem:[%s3139_s20 + $0x78] sm:$0xff]  }
  0x1f   : > { %v352_v43 = vor.u32 %v4343_v4, %v349_v19  ;;  %v356_v49 = vrot.slane %v4341_v21, 7  ;;  %v397_v52 = vsel %vm3167_vm4, 0, %v296_v29  ;;  %v4346_v60 = vshrl.u32 %v3312_v40, 16 }
  0x20   : > { %v303_v56 = vor.u32 %v301_v13, %v300_v30  ;;  %v307_v57 = vrot.slane %v305_v31, 7  ;;  %v4349_v29 = vshll.u32 %v3312_v40, 16  ;;  %v312_v30 = vshrl.u32 %v3319_v51, 16 }
  0x21   : > { %2743 = vmatmul.mubr.msk.bf16.gmra.mxu0 %vm413_vm3, %v3291_v7  ;;  %v3338_v9 = vsel %vm3167_vm4, 0, %v352_v43  ;;  %v359_v19 = vor.u32 %v4344_v25, %v356_v49  ;;  %v363_v3 = vrot.slane %v4346_v60, 7  ;;  %v4348_v4 = vshrl.u32 %v3333_v2, 16 }
  0x22   : > { %2759 = vmatmul.mubr.msk.bf16.gmra.mxu1 %vm413_vm3, %v3299_v18  ;;  %2746 = vmatprep.mubr.msk.bf16.mxu0 %vm413_vm3, %v397_v52  ;;  %v310_v21 = vor.u32 %v308_v39, %v307_v57  ;;  %v398_v43 = vsel %vm3167_vm4, 0, %v303_v56  ;;  %v315_v25 = vshll.u32 %v3319_v51, 16  ;;  %v314_v57 = vrot.slane %v312_v30, 7 }
  0x23   : > { %2762 = vmatprep.mubr.msk.bf16.mxu1 %vm413_vm3, %v3338_v9  ;;  %v366_v49 = vor.u32 %v4349_v29, %v363_v3  ;;  %v3358_v50 = vsel %vm3167_vm4, 0, %v359_v19  ;;  %v370_v60 = vrot.slane %v4348_v4, 7  ;;  %v371_v41 = vshll.u32 %v3333_v2, 16 }
  0x24   : > { %v399_v56 = vsel %vm3167_vm4, 0, %v310_v21  ;;  %v317_v19 = vor.u32 %v315_v25, %v314_v57  ;;  %v3091_v29 = vmov 0   ;;  %v2516_v57 = vcombine.low %v3130_v5, %v3130_v5 }
  0x25   : > { %v3369_v3 = vsel %vm3167_vm4, 0, %v366_v49  ;;  %v373_v4 = vor.u32 %v371_v41, %v370_v60  ;;  %v1025_v60 = vsel %vm462_vm0, %v3151_v11, 0  ;;  %v1620_v5 = vrot.slane %v273_v23, 1 }
  0x26   : > { %v400_v21 = vsel %vm3167_vm4, 0, %v317_v19  ;;  %v1622_v11 = vrot.slane %v280_v36, 1  ;;  %v1624_v23 = vrot.slane %v287_v46, 1  ;;  %v1628_v46 = vrot.slane %v301_v13, 1 }
  0x27   : > { %v408_v49 = vsel %vm3167_vm4, 0, %v373_v4  ;;  %v1421_v4 = vrot.slane %v2516_v57, 2  ;;  %v4356_v19 = vshll.u32 %v3250_v55, 16 }
  0x29   : > { %2747 = vmatmul.mubr.msk.bf16.gmra.mxu0 %vm413_vm3, %v398_v43 }
  0x2a   : > { %2763 = vmatmul.mubr.msk.bf16.gmra.mxu1 %vm413_vm3, %v3358_v50  ;;  %2750 = vmatprep.mubr.msk.bf16.mxu0 %vm413_vm3, %v399_v56 }
  0x2b   : > { %2766 = vmatprep.mubr.msk.bf16.mxu1 %vm413_vm3, %v3369_v3 }
  0x31   : > { %2751 = vmatmul.mubr.msk.bf16.gmra.mxu0 %vm413_vm3, %v400_v21 }
  0x32   : > { %2767 = vmatmul.mubr.msk.bf16.gmra.mxu1 %vm413_vm3, %v408_v49  ;;  %2806 = vmatprep.mubr.msk.bf16.mxu0 %vm413_vm3, %v3228_v47 }
  0x33   : > { %2772 = vmatprep.mubr.bf16.mxu1 %v3091_v29 }
  0x39   : > { %2807 = vmatmul.mubr.msk.bf16.vlgmr.msra.gmra.mxu0 %vm413_vm3, %v3261_v59 }
  0x3a   : > { %2773 = vmatmul.mubr.msk.bf16.vlgmr.msra.gmra.mxu1 %vm413_vm3, %v3196_v34  ;;  %2873 = vmatpush3.bf16.msra.mxu0 %v1223_v20  ;;  %v3411_v34 = vor.u32 %v1620_v5, %v270_v22  ;;  %v3427_v22 = vor.u32 %v1624_v23, %v284_v45  ;;  %v3443_v45 = vor.u32 %v1628_v46, %v298_v12  ;;  %v181_v12 = vld [vmem:[%s4339_s1 + $0x10] sm:$0x3]  ;;  %v4358_v5 = vshrl.u32 %v3250_v55, 16 }
  0x3b   : > { %2839 = vmatpush3.bf16.msra.mxu1 %v1025_v60  ;;  %2776 = vmatprep.mubr.msk.bf16.mxu1 %vm413_vm3, %v3228_v47  ;;  %v3415_v47 = vor.u32 %v1622_v11, %v277_v35  ;;  %v1626_v35 = vrot.slane %v294_v62, 1  ;;  %v1632_v62 = vrot.slane %v315_v25, 1  ;;  %v2130_v13 = vsel %vm462_vm0, %v181_v12, 0 }
  0x3c   : > { %2810 = vmatprep.mubr.msk.bf16.mxu0 %vm413_vm3, %v3291_v7  ;;  %3050 = vmatprep.subr.msk.bf16.mxu1 %vm462_vm0, %v1421_v4  ;;  %v1636_v25 = vrot.slane %v329_v27, 1  ;;  %v4359_v23 = vshrl.u32 %v3268_v63, 16 }
  0x3d   : > { %3051 = vmatprep.subr.msk.bf16.mxu0 %vm462_vm0, %v3118_v0  ;;  %v3433_v36 = vor.u32 %v1626_v35, %v291_v61 }
  0x41   : > { %2811 = vmatmul.mubr.msk.bf16.gmra.mxu0 %vm413_vm3, %v397_v52 }
  0x42   : > { %2777 = vmatmul.mubr.msk.bf16.gmra.mxu1 %vm413_vm3, %v3261_v59  ;;  %2814 = vmatprep.mubr.msk.bf16.mxu0 %vm413_vm3, %v398_v43  ;;  %v1630_v59 = vrot.slane %v308_v39, 1  ;;  %v1638_v39 = vrot.slane %v336_v44, 1 }
  0x43   : > { %2780 = vmatprep.mubr.msk.bf16.mxu1 %vm413_vm3, %v3291_v7  ;;  %v3459_v7 = vor.u32 %v1632_v62, %v312_v30 }
  0x44   : > { %v3449_v61 = vor.u32 %v1630_v59, %v305_v31  ;;  %v1637_v31 = vor.u32 %v1636_v25, %v326_v24 }
  0x49   : > { %2815 = vmatmul.mubr.msk.bf16.gmra.mxu0 %vm413_vm3, %v399_v56 }
  0x4a   : > { %2781 = vmatmul.mubr.msk.bf16.gmra.mxu1 %vm413_vm3, %v397_v52  ;;  %2818 = vmatprep.mubr.msk.bf16.mxu0 %vm413_vm3, %v400_v21  ;;  %v1640_v52 = vrot.slane %v343_v53, 1  ;;  %v4355_v53 = vshrl.u32 %v3201_v37, 16 }
  0x4b   : > { %2784 = vmatprep.mubr.msk.bf16.mxu1 %vm413_vm3, %v398_v43 }
  0x4c   : > { %v1641_v30 = vor.u32 %v1640_v52, %v4355_v53 }
  0x4e   : > { %v3697_v57 = vsel %vm3563_vm7, %v1641_v30, 0 }
  0x51   : > { %2819 = vmatmul.mubr.msk.bf16.gmra.mxu0 %vm413_vm3, %v3207_v38 }
  0x52   : > { %2785 = vmatmul.mubr.msk.bf16.gmra.mxu1 %vm413_vm3, %v399_v56  ;;  %2822 = vmatprep.mubr.msk.bf16.mxu0 %vm413_vm3, %v3232_v48 }
  0x53   : > { %2788 = vmatprep.mubr.msk.bf16.mxu1 %vm413_vm3, %v400_v21  ;;  %v1642_v21 = vrot.slane %v4356_v19, 1 }
  0x55   : > { %v1643_v11 = vor.u32 %v1642_v21, %v4358_v5 }
  0x57   : > { %v3727_v46 = vsel %vm3563_vm7, %v1643_v11, 0 }
  0x59   : > { %2823 = vmatmul.mubr.msk.bf16.gmra.mxu0 %vm413_vm3, %v3278_v1 }
  0x5a   : > { %2789 = vmatmul.mubr.msk.bf16.gmra.mxu1 %vm413_vm3, %v3207_v38  ;;  %2826 = vmatprep.mubr.msk.bf16.mxu0 %vm413_vm3, %v3299_v18  ;;  %v2547_v38 = vcombine.low %v3217_v42, %v3217_v42 }
  0x5b   : > { %2792 = vmatprep.mubr.msk.bf16.mxu1 %vm413_vm3, %v3232_v48  ;;  %v1423_v48 = vsel %vm462_vm0, %v1421_v4, 0 }
  0x61   : > { %2827 = vmatmul.mubr.msk.bf16.gmra.mxu0 %vm413_vm3, %v3338_v9 }
  0x62   : > { %2793 = vmatmul.mubr.msk.bf16.gmra.mxu1 %vm413_vm3, %v3278_v1  ;;  %2830 = vmatprep.mubr.msk.bf16.mxu0 %vm413_vm3, %v3358_v50  ;;  %v1929_v1 = vrot.slane %v2547_v38, 2  ;;  %v4361_v38 = vshrl.u32 %v3312_v40, 16 }
  0x63   : > { %2796 = vmatprep.mubr.msk.bf16.mxu1 %vm413_vm3, %v3299_v18  ;;  %v3577_v18 = vsel %vm3563_vm7, %v3411_v34, 0 }
  0x64   : > { %v1934_v42 = vsel %vm462_vm0, %v1929_v1, 0 }
  0x69   : > { %2831 = vmatmul.mubr.msk.bf16.gmra.mxu0 %vm413_vm3, %v3369_v3 }
  0x6a   : > { %2797 = vmatmul.mubr.msk.bf16.gmra.mxu1 %vm413_vm3, %v3338_v9  ;;  %2834 = vmatprep.mubr.msk.bf16.mxu0 %vm413_vm3, %v408_v49 }
  0x6b   : > { %2800 = vmatprep.mubr.msk.bf16.mxu1 %vm413_vm3, %v3358_v50  ;;  %v1731_v50 = vsel %vm462_vm0, %v3118_v0, 0 }
  0x71   : > { %2835 = vmatmul.mubr.bf16.gmra.mxu0 %v3091_v29 }
  0x72   : > { %2801 = vmatmul.mubr.msk.bf16.gmra.mxu1 %vm413_vm3, %v3369_v3  ;;  %2874 = vmatprep.mubr.msk.bf16.mxu0 %vm413_vm3, %v3143_v8 }
  0x73   : > { %2840 = vmatprep.mubr.bf16.mxu1 %v3091_v29 }
  0x79   : > { %2875 = vmatmul.mubr.msk.bf16.vlgmr.msra.gmra.mxu0 %vm413_vm3, %v3160_v16 }
  0x7a   : > { %2841 = vmatmul.mubr.msk.bf16.vlgmr.msra.gmra.mxu1 %vm413_vm3, %v3143_v8  ;;  %2941 = vmatpush3.bf16.msra.mxu0 %v1731_v50  ;;  %v3570_v8 = vsel %vm3563_vm7, %v3176_v26, 0  ;;  %v3595_v26 = vsel %vm3563_vm7, %v3427_v22, 0 }
  0x7b   : > { %2907 = vmatpush3.bf16.msra.mxu1 %v1423_v48  ;;  %2844 = vmatprep.mubr.msk.bf16.mxu1 %vm413_vm3, %v3160_v16 }
  0x7c   : > { %2878 = vmatprep.mubr.msk.bf16.mxu0 %vm413_vm3, %v3180_v28  ;;  %3052 = vmatprep.subr.msk.bf16.mxu1 %vm462_vm0, %v1929_v1 }
  0x7d   : > { %3053 = vmatprep.subr.msk.bf16.mxu0 %vm462_vm0, %v181_v12 }
  0x81   : > { %2879 = vmatmul.mubr.msk.bf16.gmra.mxu0 %vm413_vm3, %v3192_v33 }
  0x82   : > { %2845 = vmatmul.mubr.msk.bf16.gmra.mxu1 %vm413_vm3, %v3180_v28  ;;  %2882 = vmatprep.mubr.msk.bf16.mxu0 %vm413_vm3, %v3247_v54 }
  0x83   : > { %2848 = vmatprep.mubr.msk.bf16.mxu1 %vm413_vm3, %v3192_v33 }
  0x89   : > { %2883 = vmatmul.mubr.msk.bf16.gmra.mxu0 %vm413_vm3, %v3257_v58 }
  0x8a   : > { %2849 = vmatmul.mubr.msk.bf16.gmra.mxu1 %vm413_vm3, %v3247_v54  ;;  %2886 = vmatprep.mubr.msk.bf16.mxu0 %vm413_vm3, %v3285_v6 }
  0x8b   : > { %2852 = vmatprep.mubr.msk.bf16.mxu1 %vm413_vm3, %v3257_v58 }
  0x91   : > { %2887 = vmatmul.mubr.msk.bf16.gmra.mxu0 %vm413_vm3, %v3319_v51 }
  0x92   : > { %2853 = vmatmul.mubr.msk.bf16.gmra.mxu1 %vm413_vm3, %v3285_v6  ;;  %2890 = vmatprep.mubr.msk.bf16.mxu0 %vm413_vm3, %v3148_v10 }
  0x93   : > { %2856 = vmatprep.mubr.msk.bf16.mxu1 %vm413_vm3, %v3319_v51 }
  0x99   : > { %2891 = vmatmul.mubr.msk.bf16.gmra.mxu0 %vm413_vm3, %v3163_v17 }
  0x9a   : > { %2857 = vmatmul.mubr.msk.bf16.gmra.mxu1 %vm413_vm3, %v3148_v10  ;;  %2894 = vmatprep.mubr.msk.bf16.mxu0 %vm413_vm3, %v3189_v32 }
  0x9b   : > { %2860 = vmatprep.mubr.msk.bf16.mxu1 %vm413_vm3, %v3163_v17 }
  0xa1   : > { %2895 = vmatmul.mubr.msk.bf16.gmra.mxu0 %vm413_vm3, %v3201_v37 }
  0xa2   : > { %2861 = vmatmul.mubr.msk.bf16.gmra.mxu1 %vm413_vm3, %v3189_v32  ;;  %2898 = vmatprep.mubr.msk.bf16.mxu0 %vm413_vm3, %v3250_v55 }
  0xa3   : > { %2864 = vmatprep.mubr.msk.bf16.mxu1 %vm413_vm3, %v3201_v37 }
  0xa9   : > { %2899 = vmatmul.mubr.msk.bf16.gmra.mxu0 %vm413_vm3, %v3268_v63 }
  0xaa   : > { %2865 = vmatmul.mubr.msk.bf16.gmra.mxu1 %vm413_vm3, %v3250_v55  ;;  %2902 = vmatprep.mubr.msk.bf16.mxu0 %vm413_vm3, %v3312_v40 }
  0xab   : > { %2868 = vmatprep.mubr.msk.bf16.mxu1 %vm413_vm3, %v3268_v63 }
  0xb1   : > { %2903 = vmatmul.mubr.msk.bf16.gmra.mxu0 %vm413_vm3, %v3333_v2 }
  0xb2   : > { %2869 = vmatmul.mubr.msk.bf16.gmra.mxu1 %vm413_vm3, %v3312_v40  ;;  %2942 = vmatprep.mubr.bf16.mxu0 %v3091_v29 }
  0xb3   : > { %2908 = vmatprep.mubr.msk.bf16.mxu1 %vm413_vm3, %v3160_v16  ;;  %v3590_v16 = vsel %vm3563_vm7, %v3415_v47, 0 }
  0xb9   : > { %2943 = vmatmul.mubr.msk.bf16.vlgmr.msra.gmra.mxu0 %vm413_vm3, %v3570_v8 }
  0xba   : > { %2909 = vmatmul.mubr.msk.bf16.vlgmr.msra.gmra.mxu1 %vm413_vm3, %v3180_v28  ;;  %3009 = vmatpush3.bf16.msra.mxu0 %v2130_v13  ;;  %v3608_v28 = vsel %vm3563_vm7, %v3433_v36, 0 }
  0xbb   : > { %2975 = vmatpush3.bf16.msra.mxu1 %v1934_v42  ;;  %2912 = vmatprep.mubr.msk.bf16.mxu1 %vm413_vm3, %v3192_v33  ;;  %v3613_v33 = vsel %vm3563_vm7, %v3443_v45, 0  ;;  %v4360_v45 = vshll.u32 %v3312_v40, 16 }
  0xbc   : > { %2946 = vmatprep.mubr.msk.bf16.mxu0 %vm413_vm3, %v3577_v18 }
  0xbd   : > { %v1646_v59 = vrot.slane %v4360_v45, 1 }
  0xbf   : > { %v1647_v48 = vor.u32 %v1646_v59, %v4361_v38 }
  0xc1   : > { %2947 = vmatmul.mubr.msk.bf16.gmra.mxu0 %vm413_vm3, %v3590_v16  ;;  %v3763_v13 = vsel %vm3563_vm7, %v1647_v48, 0 }
  0xc2   : > { %2913 = vmatmul.mubr.msk.bf16.gmra.mxu1 %vm413_vm3, %v3247_v54  ;;  %2950 = vmatprep.mubr.msk.bf16.mxu0 %vm413_vm3, %v3595_v26  ;;  %v3626_v54 = vsel %vm3563_vm7, %v3449_v61, 0 }
  0xc3   : > { %2916 = vmatprep.mubr.msk.bf16.mxu1 %vm413_vm3, %v3257_v58  ;;  %v1634_v58 = vrot.slane %v322_v15, 1 }
  0xc5   : > { %v1635_v15 = vor.u32 %v1634_v58, %v319_v14  ;;  %v4354_v14 = vshrl.u32 %v3189_v32, 16 }
  0xc7   : > { %v3651_v27 = vsel %vm3563_vm7, %v1635_v15, 0 }
  0xc9   : > { %2951 = vmatmul.mubr.msk.bf16.gmra.mxu0 %vm413_vm3, %v3608_v28 }
  0xca   : > { %2917 = vmatmul.mubr.msk.bf16.gmra.mxu1 %vm413_vm3, %v3285_v6  ;;  %2954 = vmatprep.mubr.msk.bf16.mxu0 %vm413_vm3, %v3613_v33  ;;  %v3633_v6 = vsel %vm3563_vm7, %v3459_v7, 0 }
  0xcb   : > { %2920 = vmatprep.mubr.msk.bf16.mxu1 %vm413_vm3, %v3319_v51  ;;  %v3657_v51 = vsel %vm3563_vm7, %v1637_v31, 0 }
  0xd1   : > { %2955 = vmatmul.mubr.msk.bf16.gmra.mxu0 %vm413_vm3, %v3626_v54 }
  0xd2   : > { %2921 = vmatmul.mubr.msk.bf16.gmra.mxu1 %vm413_vm3, %v3148_v10  ;;  %2958 = vmatprep.mubr.msk.bf16.mxu0 %vm413_vm3, %v3633_v6 }
  0xd3   : > { %2924 = vmatprep.mubr.msk.bf16.mxu1 %vm413_vm3, %v3163_v17  ;;  %v1639_v17 = vor.u32 %v1638_v39, %v4354_v14 }
  0xd5   : > { %v3687_v3 = vsel %vm3563_vm7, %v1639_v17, 0 }
  0xd9   : > { %v3661_v9 = vpop.f32.mrf.mxu0  ;;  %2959 = vmatmul.mubr.msk.bf16.gmra.mxu0 %vm413_vm3, %v3651_v27 }
  0xda   : > { %v3663_v10 = vpop.f32.mrf.mxu1  ;;  %2925 = vmatmul.mubr.msk.bf16.gmra.mxu1 %vm413_vm3, %v3189_v32  ;;  %2962 = vmatprep.mubr.msk.bf16.mxu0 %vm413_vm3, %v3657_v51 }
  0xdb   : > { %2928 = vmatprep.mubr.msk.bf16.mxu1 %vm413_vm3, %v3201_v37  ;;  %v3675_v24 = vpop.f32.mrf.mxu0  ;;  %v4357_v37 = vshll.u32 %v3268_v63, 16 }
  0xdc   : > { %v3677_v44 = vpop.f32.mrf.mxu1 }
  0xdd   : > { %v3681_v43 = vpop.f32.mrf.mxu0  ;;  %v1644_v60 = vrot.slane %v4357_v37, 1 }
  0xde   : > { %v3683_v56 = vpop.f32.mrf.mxu1 }
  0xdf   : > { %v3691_v32 = vpop.f32.mrf.mxu0  ;;  %v1645_v22 = vor.u32 %v1644_v60, %v4359_v23 }
  0xe0   : > { %v3693_v49 = vpop.f32.mrf.mxu1 }
  0xe1   : > { %v3701_v20 = vpop.f32.mrf.mxu0  ;;  %2963 = vmatmul.mubr.msk.bf16.gmra.mxu0 %vm413_vm3, %v3687_v3  ;;  %v3737_v62 = vsel %vm3563_vm7, %v1645_v22, 0 }
  0xe2   : > { %v3703_v4 = vpop.f32.mrf.mxu1  ;;  %2929 = vmatmul.mubr.msk.bf16.gmra.mxu1 %vm413_vm3, %v3250_v55  ;;  %2966 = vmatprep.mubr.msk.bf16.mxu0 %vm413_vm3, %v3697_v57 }
  0xe3   : > { %2932 = vmatprep.mubr.msk.bf16.mxu1 %vm413_vm3, %v3268_v63  ;;  %v3715_v34 = vpop.f32.mrf.mxu0 }
  0xe4   : > { %v3717_v47 = vpop.f32.mrf.mxu1 }
  0xe5   : > { %v3721_v35 = vpop.f32.mrf.mxu0 }
  0xe6   : > { %v3723_v36 = vpop.f32.mrf.mxu1 }
  0xe7   : > { %v3731_v55 = vpop.f32.mrf.mxu0 }
  0xe8   : > { %v3733_v61 = vpop.f32.mrf.mxu1 }
  0xe9   : > { %v3739_v63 = vpop.f32.mrf.mxu0  ;;  %2967 = vmatmul.mubr.msk.bf16.gmra.mxu0 %vm413_vm3, %v3727_v46 }
  0xea   : > { %v3741_v7 = vpop.f32.mrf.mxu1  ;;  %2933 = vmatmul.mubr.msk.bf16.gmra.mxu1 %vm413_vm3, %v3312_v40  ;;  %2970 = vmatprep.mubr.msk.bf16.mxu0 %vm413_vm3, %v3737_v62 }
  0xeb   : > { %2936 = vmatprep.mubr.msk.bf16.mxu1 %vm413_vm3, %v3333_v2  ;;  %v3753_v50 = vpop.f32.mrf.mxu0 }
  0xec   : > { %v3755_v1 = vpop.f32.mrf.mxu1 }
  0xed   : > { %v3757_v12 = vpop.f32.mrf.mxu0 }
  0xee   : > { %v3759_v42 = vpop.f32.mrf.mxu1 }
  0xef   : > { %v3765_v58 = vpop.f32.mrf.mxu0 }
  0xf0   : > { %v3767_v25 = vpop.f32.mrf.mxu1 }
  0xf1   : > { %v3769_v15 = vpop.f32.mrf.mxu0  ;;  %2971 = vmatmul.mubr.msk.bf16.gmra.mxu0 %vm413_vm3, %v3763_v13 }
  0xf2   : > { %v3771_v40 = vpop.f32.mrf.mxu1  ;;  %2937 = vmatmul.mubr.bf16.gmra.mxu1 %v3091_v29  ;;  %3010 = vmatprep.mubr.msk.bf16.mxu0 %vm413_vm3, %v3577_v18 }
  0xf3   : > { %2976 = vmatprep.mubr.msk.bf16.mxu1 %vm413_vm3, %v3570_v8  ;;  %v3780_v31 = vpop.f32.mrf.mxu0 }
  0xf4   : > { %v3782_v39 = vpop.f32.mrf.mxu1 }
  0xf5   : > { %v3784_v52 = vpop.f32.mrf.mxu0 }
  0xf6   : > { %v3786_v14 = vpop.f32.mrf.mxu1 }
  0xf7   : > { %v3788_v17 = vpop.f32.mrf.mxu0 }
  0xf8   : > { %v3790_v53 = vpop.f32.mrf.mxu1 }
  0xf9   : > { %v2808_v19 = vpop.f32.mrf.mxu0  ;;  %3011 = vmatmul.mubr.msk.bf16.vlgmr.msra.gmra.mxu0 %vm413_vm3, %v3590_v16 }
  0xfa   : > { %v2774_v30 = vpop.f32.mrf.mxu1  ;;  %2977 = vmatmul.mubr.msk.bf16.vlgmr.msra.gmra.mxu1 %vm413_vm3, %v3577_v18  ;;  %3014 = vmatprep.mubr.msk.bf16.mxu0 %vm413_vm3, %v3595_v26 }
  0xfb   : > { %v676_v8 = vadd.f32 %v2774_v30, %v3661_v9  ;;  %2980 = vmatprep.mubr.msk.bf16.mxu1 %vm413_vm3, %v3590_v16  ;;  %v831_v37 = vpop.f32.mrf.mxu0 }
  0xfc   : > { %v667_v21 = vpop.f32.mrf.mxu1 }
  0xfd   : > { %v3801_v60 = vadd.f32 %v2808_v19, %v676_v8  ;;  %v668_v5 = vadd.f32 %v667_v21, %v3675_v24  ;;  %v2809_v23 = vpop.f32.mrf.mxu0 }
  0xfe   : > { %v2775_v11 = vpop.f32.mrf.mxu1 }
  0xff   : > { %v3804_v18 = vadd.f32 %v831_v37, %v668_v5  ;;  %v679_v22 = vadd.f32 %v2775_v11, %v3681_v43  ;;  %v834_v9 = vpop.f32.mrf.mxu0 }
 0x100   : > { %v670_v45 = vpop.f32.mrf.mxu1 }
 0x101   : > { %v3807_v59 = vadd.f32 %v2809_v23, %v679_v22  ;;  %v671_v16 = vadd.f32 %v670_v45, %v3691_v32  ;;  %v2812_v48 = vpop.f32.mrf.mxu0  ;;  %3015 = vmatmul.mubr.msk.bf16.gmra.mxu0 %vm413_vm3, %v3608_v28 }
 0x102   : > { %v2778_v38 = vpop.f32.mrf.mxu1  ;;  %2981 = vmatmul.mubr.msk.bf16.gmra.mxu1 %vm413_vm3, %v3595_v26  ;;  %3018 = vmatprep.mubr.msk.bf16.mxu0 %vm413_vm3, %v3613_v33 }
 0x103   : > { %v3814_v24 = vadd.f32 %v834_v9, %v671_v16  ;;  %v692_v30 = vadd.f32 %v2778_v38, %v3701_v20  ;;  %2984 = vmatprep.mubr.msk.bf16.mxu1 %vm413_vm3, %v3608_v28  ;;  %v847_v32 = vpop.f32.mrf.mxu0 }
 0x104   : > { %v683_v43 = vpop.f32.mrf.mxu1 }
 0x105   : > { %v3821_v19 = vadd.f32 %v2812_v48, %v692_v30  ;;  %v684_v8 = vadd.f32 %v683_v43, %v3715_v34  ;;  %v2813_v21 = vpop.f32.mrf.mxu0 }
 0x106   : > { %v2779_v26 = vpop.f32.mrf.mxu1 }
 0x107   : > { %v3824_v37 = vadd.f32 %v847_v32, %v684_v8  ;;  %v695_v5 = vadd.f32 %v2779_v26, %v3721_v35  ;;  %v850_v20 = vpop.f32.mrf.mxu0 }
 0x108   : > { %v686_v11 = vpop.f32.mrf.mxu1 }
 0x109   : > { %v3827_v23 = vadd.f32 %v2813_v21, %v695_v5  ;;  %v687_v28 = vadd.f32 %v686_v11, %v3731_v55  ;;  %v2816_v45 = vpop.f32.mrf.mxu0  ;;  %3019 = vmatmul.mubr.msk.bf16.gmra.mxu0 %vm413_vm3, %v3626_v54 }
 0x10a   : > { %v2782_v22 = vpop.f32.mrf.mxu1  ;;  %2985 = vmatmul.mubr.msk.bf16.gmra.mxu1 %vm413_vm3, %v3613_v33  ;;  %3022 = vmatprep.mubr.msk.bf16.mxu0 %vm413_vm3, %v3633_v6 }
 0x10b   : > { %v3834_v34 = vadd.f32 %v850_v20, %v687_v28  ;;  %v708_v9 = vadd.f32 %v2782_v22, %v3739_v63  ;;  %2988 = vmatprep.mubr.msk.bf16.mxu1 %vm413_vm3, %v3626_v54  ;;  %v863_v55 = vpop.f32.mrf.mxu0 }
 0x10c   : > { %v699_v35 = vpop.f32.mrf.mxu1 }
 0x10d   : > { %v3841_v16 = vadd.f32 %v2816_v45, %v708_v9  ;;  %v700_v38 = vadd.f32 %v699_v35, %v3753_v50  ;;  %v2817_v48 = vpop.f32.mrf.mxu0 }
 0x10e   : > { %v2783_v33 = vpop.f32.mrf.mxu1 }
 0x10f   : > { %v3844_v30 = vadd.f32 %v863_v55, %v700_v38  ;;  %v711_v43 = vadd.f32 %v2783_v33, %v3757_v12  ;;  %v866_v63 = vpop.f32.mrf.mxu0 }
 0x110   : > { %v702_v32 = vpop.f32.mrf.mxu1 }
 0x111   : > { %v3847_v8 = vadd.f32 %v2817_v48, %v711_v43  ;;  %v703_v54 = vadd.f32 %v702_v32, %v3765_v58  ;;  %v2820_v21 = vpop.f32.mrf.mxu0  ;;  %3023 = vmatmul.mubr.msk.bf16.gmra.mxu0 %vm413_vm3, %v3651_v27 }
 0x112   : > { %v2786_v26 = vpop.f32.mrf.mxu1  ;;  %2989 = vmatmul.mubr.msk.bf16.gmra.mxu1 %vm413_vm3, %v3633_v6  ;;  %3026 = vmatprep.mubr.msk.bf16.mxu0 %vm413_vm3, %v3657_v51 }
 0x113   : > { %v3854_v50 = vadd.f32 %v866_v63, %v703_v54  ;;  %v724_v5 = vadd.f32 %v2786_v26, %v3769_v15  ;;  %2992 = vmatprep.mubr.msk.bf16.mxu1 %vm413_vm3, %v3651_v27  ;;  %v879_v58 = vpop.f32.mrf.mxu0 }
 0x114   : > { %v715_v12 = vpop.f32.mrf.mxu1 }
 0x115   : > { %v3861_v11 = vadd.f32 %v2820_v21, %v724_v5  ;;  %v716_v20 = vadd.f32 %v715_v12, %v3780_v31  ;;  %v2821_v28 = vpop.f32.mrf.mxu0 }
 0x116   : > { %v2787_v6 = vpop.f32.mrf.mxu1 }
 0x117   : > { %v3864_v22 = vadd.f32 %v879_v58, %v716_v20  ;;  %v727_v45 = vadd.f32 %v2787_v6, %v3784_v52  ;;  %v882_v15 = vpop.f32.mrf.mxu0  ;;  %v4362_v20 = vshrl.u32 %v3333_v2, 16 }
 0x118   : > { %v718_v9 = vpop.f32.mrf.mxu1 }
 0x119   : > { %v3867_v35 = vadd.f32 %v2821_v28, %v727_v45  ;;  %v719_v27 = vadd.f32 %v718_v9, %v3788_v17  ;;  %v2824_v38 = vpop.f32.mrf.mxu0  ;;  %3027 = vmatmul.mubr.msk.bf16.gmra.mxu0 %vm413_vm3, %v3687_v3 }
 0x11a   : > { %v2790_v55 = vpop.f32.mrf.mxu1  ;;  %2993 = vmatmul.mubr.msk.bf16.gmra.mxu1 %vm413_vm3, %v3657_v51  ;;  %3030 = vmatprep.mubr.msk.bf16.mxu0 %vm413_vm3, %v3697_v57 }
 0x11b   : > { %v3874_v31 = vadd.f32 %v882_v15, %v719_v27  ;;  %v740_v33 = vadd.f32 %v2790_v55, %v3663_v10  ;;  %2996 = vmatprep.mubr.msk.bf16.mxu1 %vm413_vm3, %v3687_v3  ;;  %v895_v17 = vpop.f32.mrf.mxu0  ;;  %v1648_v3 = vrot.slane %v371_v41, 1 }
 0x11c   : > { %v731_v52 = vpop.f32.mrf.mxu1 }
 0x11d   : > { %v3881_v48 = vadd.f32 %v2824_v38, %v740_v33  ;;  %v732_v43 = vadd.f32 %v731_v52, %v3677_v44  ;;  %v2825_v32 = vpop.f32.mrf.mxu0  ;;  %v1649_v6 = vor.u32 %v1648_v3, %v4362_v20 }
 0x11e   : > { %v2791_v51 = vpop.f32.mrf.mxu1 }
 0x11f   : > { %v3884_v63 = vadd.f32 %v895_v17, %v732_v43  ;;  %v743_v54 = vadd.f32 %v2791_v51, %v3683_v56  ;;  %v898_v10 = vpop.f32.mrf.mxu0  ;;  %v1684_v55 = vsel %vm3563_vm7, %v1649_v6, 0 }
 0x120   : > { %v734_v26 = vpop.f32.mrf.mxu1 }
 0x121   : > { %v3889_v21 = vadd.f32 %v2825_v32, %v743_v54  ;;  %v735_v5 = vadd.f32 %v734_v26, %v3693_v49  ;;  %v2828_v58 = vpop.f32.mrf.mxu0  ;;  %3031 = vmatmul.mubr.msk.bf16.gmra.mxu0 %vm413_vm3, %v3727_v46 }
 0x122   : > { %v2794_v12 = vpop.f32.mrf.mxu1  ;;  %2997 = vmatmul.mubr.msk.bf16.gmra.mxu1 %vm413_vm3, %v3697_v57  ;;  %3034 = vmatprep.mubr.msk.bf16.mxu0 %vm413_vm3, %v3737_v62 }
 0x123   : > { %v3896_v44 = vadd.f32 %v898_v10, %v735_v5  ;;  %v756_v56 = vadd.f32 %v2794_v12, %v3703_v4  ;;  %3000 = vmatprep.mubr.msk.bf16.mxu1 %vm413_vm3, %v3727_v46  ;;  %v911_v49 = vpop.f32.mrf.mxu0 }
 0x124   : > { %v747_v41 = vpop.f32.mrf.mxu1 }
 0x125   : > { %v3905_v28 = vadd.f32 %v2828_v58, %v756_v56  ;;  %v748_v57 = vadd.f32 %v747_v41, %v3717_v47  ;;  %v2829_v9 = vpop.f32.mrf.mxu0 }
 0x126   : > { %v2795_v45 = vpop.f32.mrf.mxu1 }
 0x127   : > { %v3908_v15 = vadd.f32 %v911_v49, %v748_v57  ;;  %v759_v4 = vadd.f32 %v2795_v45, %v3723_v36  ;;  %v914_v46 = vpop.f32.mrf.mxu0 }
 0x128   : > { %v750_v27 = vpop.f32.mrf.mxu1 }
 0x129   : > { %v3913_v38 = vadd.f32 %v2829_v9, %v759_v4  ;;  %v751_v2 = vadd.f32 %v750_v27, %v3733_v61  ;;  %v2832_v52 = vpop.f32.mrf.mxu0  ;;  %3035 = vmatmul.mubr.msk.bf16.gmra.mxu0 %vm413_vm3, %v3763_v13 }
 0x12a   : > { %v2798_v33 = vpop.f32.mrf.mxu1  ;;  %3001 = vmatmul.mubr.msk.bf16.gmra.mxu1 %vm413_vm3, %v3737_v62  ;;  %3038 = vmatprep.mubr.msk.bf16.mxu0 %vm413_vm3, %v1684_v55 }
 0x12b   : > { %v3920_v47 = vadd.f32 %v914_v46, %v751_v2  ;;  %v772_v36 = vadd.f32 %v2798_v33, %v3741_v7  ;;  %3004 = vmatprep.mubr.msk.bf16.mxu1 %vm413_vm3, %v3763_v13  ;;  %v927_v17 = vpop.f32.mrf.mxu0 }
 0x12c   : > { %v763_v0 = vpop.f32.mrf.mxu1 }
 0x12d   : > { %v3926_v61 = vadd.f32 %v2832_v52, %v772_v36  ;;  %v764_v43 = vadd.f32 %v763_v0, %v3755_v1  ;;  %v2833_v62 = vpop.f32.mrf.mxu0 }
 0x12e   : > { %v2799_v51 = vpop.f32.mrf.mxu1 }
 0x12f   : > { %v3929_v32 = vadd.f32 %v927_v17, %v764_v43  ;;  %v775_v54 = vadd.f32 %v2799_v51, %v3759_v42  ;;  %v930_v10 = vpop.f32.mrf.mxu0 }
 0x130   : > { %v766_v26 = vpop.f32.mrf.mxu1 }
 0x131   : > { %v3932_v7 = vadd.f32 %v2833_v62, %v775_v54  ;;  %v767_v13 = vadd.f32 %v766_v26, %v3767_v25  ;;  %v2836_v5 = vpop.f32.mrf.mxu0  ;;  %3039 = vmatmul.mubr.bf16.gmra.mxu0 %v3091_v29 }
 0x132   : > { %v2802_v3 = vpop.f32.mrf.mxu1  ;;  %3005 = vmatmul.mubr.msk.bf16.gmra.mxu1 %vm413_vm3, %v1684_v55 }
 0x133   : > { %v3937_v12 = vadd.f32 %v930_v10, %v767_v13  ;;  %v788_v1 = vadd.f32 %v2802_v3, %v3771_v40  ;;  %v943_v56 = vpop.f32.mrf.mxu0 }
 0x134   : > { %v779_v58 = vpop.f32.mrf.mxu1 }
 0x135   : > { %v3940_v41 = vadd.f32 %v2836_v5, %v788_v1  ;;  %v780_v42 = vadd.f32 %v779_v58, %v3782_v39  ;;  %v2837_v20 = vpop.f32.mrf.mxu0 }
 0x136   : > { %v2803_v49 = vpop.f32.mrf.mxu1 }
 0x137   : > { %v3943_v6 = vadd.f32 %v943_v56, %v780_v42  ;;  %v791_v25 = vadd.f32 %v2803_v49, %v3786_v14  ;;  %v946_v45 = vpop.f32.mrf.mxu0 }
 0x138   : > { %v782_v57 = vpop.f32.mrf.mxu1 }
 0x139   : > { %v3946_v9 = vadd.f32 %v2837_v20, %v791_v25  ;;  %v783_v29 = vadd.f32 %v782_v57, %v3790_v53  ;;  %v2876_v40 = vpop.f32.mrf.mxu0 }
 0x13a   : > { %v2842_v4 = vpop.f32.mrf.mxu1 }
 0x13b   : > { %v3949_v27 = vadd.f32 %v946_v45, %v783_v29  ;;  %v1190_v46 = vadd.f32 %v2842_v4, %v3801_v60  ;;  %v1259_v39 = vpop.f32.mrf.mxu0 }
 0x13c   : > { %v1061_v55 = vpop.f32.mrf.mxu1 }
 0x13d   : > { %v3952_v2 = vadd.f32 %v2876_v40, %v1190_v46  ;;  %v1188_v33 = vadd.f32 %v1061_v55, %v3804_v18  ;;  %v2877_v14 = vpop.f32.mrf.mxu0 }
 0x13e   : > { %v2843_v52 = vpop.f32.mrf.mxu1 }
 0x13f   : > { %v3955_v36 = vadd.f32 %v1259_v39, %v1188_v33  ;;  %v1191_v0 = vadd.f32 %v2843_v52, %v3807_v59  ;;  %v1262_v53 = vpop.f32.mrf.mxu0 }
 0x140   : > { %v1064_v17 = vpop.f32.mrf.mxu1 }
 0x141   : > { %v3958_v43 = vadd.f32 %v2877_v14, %v1191_v0  ;;  %v1189_v51 = vadd.f32 %v1064_v17, %v3814_v24  ;;  %v2880_v60 = vpop.f32.mrf.mxu0 }
 0x142   : > { %v2846_v62 = vpop.f32.mrf.mxu1 }
 0x143   : > { %v3961_v54 = vadd.f32 %v1262_v53, %v1189_v51  ;;  %v1194_v26 = vadd.f32 %v2846_v62, %v3821_v19  ;;  %v1275_v18 = vpop.f32.mrf.mxu0 }
 0x144   : > { %v1077_v10 = vpop.f32.mrf.mxu1 }
 0x145   : > { %v3964_v13 = vadd.f32 %v2880_v60, %v1194_v26  ;;  %v1192_v3 = vadd.f32 %v1077_v10, %v3824_v37  ;;  %v2881_v59 = vpop.f32.mrf.mxu0 }
 0x146   : > { %v2847_v5 = vpop.f32.mrf.mxu1 }
 0x147   : > { %v3967_v1 = vadd.f32 %v1275_v18, %v1192_v3  ;;  %v1195_v58 = vadd.f32 %v2847_v5, %v3827_v23  ;;  %v1278_v24 = vpop.f32.mrf.mxu0 }
 0x148   : > { %v1080_v56 = vpop.f32.mrf.mxu1 }
 0x149   : > { %v3970_v42 = vadd.f32 %v2881_v59, %v1195_v58  ;;  %v1193_v49 = vadd.f32 %v1080_v56, %v3834_v34  ;;  %v2884_v19 = vpop.f32.mrf.mxu0 }
 0x14a   : > { %v2850_v20 = vpop.f32.mrf.mxu1 }
 0x14b   : > { %v3973_v25 = vadd.f32 %v1278_v24, %v1193_v49  ;;  %v1198_v57 = vadd.f32 %v2850_v20, %v3841_v16  ;;  %v1291_v37 = vpop.f32.mrf.mxu0 }
 0x14c   : > { %v1093_v45 = vpop.f32.mrf.mxu1 }
 0x14d   : > { %v3976_v29 = vadd.f32 %v2884_v19, %v1198_v57  ;;  %v1196_v4 = vadd.f32 %v1093_v45, %v3844_v30  ;;  %v2885_v23 = vpop.f32.mrf.mxu0 }
 0x14e   : > { %v2851_v40 = vpop.f32.mrf.mxu1 }
 0x14f   : > { %v3979_v46 = vadd.f32 %v1291_v37, %v1196_v4  ;;  %v1199_v55 = vadd.f32 %v2851_v40, %v3847_v8  ;;  %v1294_v34 = vpop.f32.mrf.mxu0 }
 0x150   : > { %v1096_v39 = vpop.f32.mrf.mxu1 }
 0x151   : > { %v3982_v33 = vadd.f32 %v2885_v23, %v1199_v55  ;;  %v1197_v52 = vadd.f32 %v1096_v39, %v3854_v50  ;;  %v2888_v16 = vpop.f32.mrf.mxu0 }
 0x152   : > { %v2854_v14 = vpop.f32.mrf.mxu1 }
 0x153   : > { %v3985_v0 = vadd.f32 %v1294_v34, %v1197_v52  ;;  %v1202_v17 = vadd.f32 %v2854_v14, %v3861_v11  ;;  %v1307_v30 = vpop.f32.mrf.mxu0 }
 0x154   : > { %v1109_v53 = vpop.f32.mrf.mxu1 }
 0x155   : > { %v3988_v51 = vadd.f32 %v2888_v16, %v1202_v17  ;;  %v1200_v62 = vadd.f32 %v1109_v53, %v3864_v22  ;;  %v2889_v8 = vpop.f32.mrf.mxu0 }
 0x156   : > { %v2855_v60 = vpop.f32.mrf.mxu1 }
 0x157   : > { %v3991_v26 = vadd.f32 %v1307_v30, %v1200_v62  ;;  %v1203_v10 = vadd.f32 %v2855_v60, %v3867_v35  ;;  %v1310_v50 = vpop.f32.mrf.mxu0 }
 0x158   : > { %v1112_v18 = vpop.f32.mrf.mxu1 }
 0x159   : > { %v3994_v3 = vadd.f32 %v2889_v8, %v1203_v10  ;;  %v1201_v5 = vadd.f32 %v1112_v18, %v3874_v31  ;;  %v2892_v11 = vpop.f32.mrf.mxu0 }
 0x15a   : > { %v2858_v59 = vpop.f32.mrf.mxu1 }
 0x15b   : > { %v3997_v58 = vadd.f32 %v1310_v50, %v1201_v5  ;;  %v1206_v56 = vadd.f32 %v2858_v59, %v3881_v48  ;;  %v1323_v22 = vpop.f32.mrf.mxu0 }
 0x15c   : > { %v1125_v24 = vpop.f32.mrf.mxu1 }
 0x15d   : > { %v4000_v49 = vadd.f32 %v2892_v11, %v1206_v56  ;;  %v1204_v20 = vadd.f32 %v1125_v24, %v3884_v63  ;;  %v2893_v35 = vpop.f32.mrf.mxu0 }
 0x15e   : > { %v2859_v19 = vpop.f32.mrf.mxu1 }
 0x15f   : > { %v4003_v57 = vadd.f32 %v1323_v22, %v1204_v20  ;;  %v1207_v45 = vadd.f32 %v2859_v19, %v3889_v21  ;;  %v1326_v31 = vpop.f32.mrf.mxu0 }
 0x160   : > { %v1128_v37 = vpop.f32.mrf.mxu1 }
 0x161   : > { %v4006_v4 = vadd.f32 %v2893_v35, %v1207_v45  ;;  %v1205_v40 = vadd.f32 %v1128_v37, %v3896_v44  ;;  %v2896_v48 = vpop.f32.mrf.mxu0 }
 0x162   : > { %v2862_v23 = vpop.f32.mrf.mxu1 }
 0x163   : > { %4363 = vst [vmem:[#allocation2_spill] sm:$0xff] %v4006_v4  ;;  %v4009_v55 = vadd.f32 %v1326_v31, %v1205_v40  ;;  %v1210_v39 = vadd.f32 %v2862_v23, %v3905_v28  ;;  %v1339_v63 = vpop.f32.mrf.mxu0 }
 0x164   : > { %v1141_v34 = vpop.f32.mrf.mxu1 }
 0x165   : > { %4364 = vst [vmem:[#allocation3_spill] sm:$0xff] %v4009_v55  ;;  %v4012_v52 = vadd.f32 %v2896_v48, %v1210_v39  ;;  %v1208_v14 = vadd.f32 %v1141_v34, %v3908_v15  ;;  %v2897_v21 = vpop.f32.mrf.mxu0 }
 0x166   : > { %v2863_v16 = vpop.f32.mrf.mxu1 }
 0x167   : > { %4365 = vst [vmem:[#allocation4_spill] sm:$0xff] %v4012_v52  ;;  %v4015_v17 = vadd.f32 %v1339_v63, %v1208_v14  ;;  %v1211_v53 = vadd.f32 %v2863_v16, %v3913_v38  ;;  %v1342_v44 = vpop.f32.mrf.mxu0 }
 0x168   : > { %v1144_v30 = vpop.f32.mrf.mxu1 }
 0x169   : > { %4366 = vst [vmem:[#allocation5_spill] sm:$0xff] %v4015_v17  ;;  %v4018_v62 = vadd.f32 %v2897_v21, %v1211_v53  ;;  %v1209_v60 = vadd.f32 %v1144_v30, %v3920_v47  ;;  %v2900_v28 = vpop.f32.mrf.mxu0 }
 0x16a   : > { %v2866_v8 = vpop.f32.mrf.mxu1 }
 0x16b   : > { %4367 = vst [vmem:[#allocation6_spill] sm:$0xff] %v4018_v62  ;;  %v4021_v10 = vadd.f32 %v1342_v44, %v1209_v60  ;;  %v1214_v18 = vadd.f32 %v2866_v8, %v3926_v61  ;;  %v1355_v15 = vpop.f32.mrf.mxu0 }
 0x16c   : > { %v1157_v50 = vpop.f32.mrf.mxu1 }
 0x16d   : > { %4368 = vst [vmem:[#allocation7_spill] sm:$0xff] %v4021_v10  ;;  %v4024_v5 = vadd.f32 %v2900_v28, %v1214_v18  ;;  %v1212_v59 = vadd.f32 %v1157_v50, %v3929_v32  ;;  %v2901_v38 = vpop.f32.mrf.mxu0 }
 0x16e   : > { %v2867_v11 = vpop.f32.mrf.mxu1 }
 0x16f   : > { %4369 = vst [vmem:[#allocation8_spill] sm:$0xff] %v4024_v5  ;;  %v4027_v56 = vadd.f32 %v1355_v15, %v1212_v59  ;;  %v1215_v24 = vadd.f32 %v2867_v11, %v3932_v7  ;;  %v1358_v47 = vpop.f32.mrf.mxu0 }
 0x170   : > { %v1160_v22 = vpop.f32.mrf.mxu1 }
 0x171   : > { %4370 = vst [vmem:[#allocation9_spill] sm:$0xff] %v4027_v56  ;;  %v4030_v20 = vadd.f32 %v2901_v38, %v1215_v24  ;;  %v1213_v19 = vadd.f32 %v1160_v22, %v3937_v12  ;;  %v2904_v61 = vpop.f32.mrf.mxu0 }
 0x172   : > { %v2870_v35 = vpop.f32.mrf.mxu1 }
 0x173   : > { %4371 = vst [vmem:[#allocation10_spill] sm:$0xff] %v4030_v20  ;;  %v4033_v45 = vadd.f32 %v1358_v47, %v1213_v19  ;;  %v1218_v37 = vadd.f32 %v2870_v35, %v3940_v41  ;;  %v1371_v32 = vpop.f32.mrf.mxu0 }
 0x174   : > { %v1173_v31 = vpop.f32.mrf.mxu1 }
 0x175   : > { %4372 = vst [vmem:[#allocation11_spill] sm:$0xff] %v4033_v45  ;;  %v4036_v40 = vadd.f32 %v2904_v61, %v1218_v37  ;;  %v1216_v23 = vadd.f32 %v1173_v31, %v3943_v6  ;;  %v2905_v7 = vpop.f32.mrf.mxu0 }
 0x176   : > { %v2871_v48 = vpop.f32.mrf.mxu1 }
 0x177   : > { %4373 = vst [vmem:[#allocation12_spill] sm:$0xff] %v4036_v40  ;;  %v4039_v39 = vadd.f32 %v1371_v32, %v1216_v23  ;;  %v1219_v34 = vadd.f32 %v2871_v48, %v3946_v9  ;;  %v1374_v12 = vpop.f32.mrf.mxu0 }
 0x178   : > { %v1176_v63 = vpop.f32.mrf.mxu1 }
 0x179   : > { %4374 = vst [vmem:[#allocation13_spill] sm:$0xff] %v4039_v39  ;;  %v4042_v14 = vadd.f32 %v2905_v7, %v1219_v34  ;;  %v1217_v16 = vadd.f32 %v1176_v63, %v3949_v27  ;;  %v4045_v41 = vpop.f32.mrf.mxu0 }
 0x17a   : > { %v2910_v21 = vpop.f32.mrf.mxu1 }
 0x17b   : > { %4375 = vst [vmem:[#allocation14_spill] sm:$0xff] %v4042_v14  ;;  %v4047_v53 = vadd.f32 %v1374_v12, %v1217_v16  ;;  %v4049_v44 = vpop.f32.mrf.mxu0 }
 0x17c   : > { %v1459_v30 = vpop.f32.mrf.mxu1 }
 0x17d   : > { %4376 = vst [vmem:[#allocation15_spill] sm:$0xff] %v4047_v53  ;;  %v4053_v60 = vpop.f32.mrf.mxu0 }
 0x17e   : > { %v4051_v6 = vpop.f32.mrf.mxu1 }
 0x17f   : > { %v4057_v9 = vpop.f32.mrf.mxu0 }
 0x180   : > { %v4055_v8 = vpop.f32.mrf.mxu1 }
 0x181   : > { %v4061_v18 = vpop.f32.mrf.mxu0 }
 0x182   : > { %v4059_v28 = vpop.f32.mrf.mxu1 }
 0x183   : > { %v4065_v50 = vpop.f32.mrf.mxu0 }
 0x184   : > { %v4063_v27 = vpop.f32.mrf.mxu1 }
 0x185   : > { %v4069_v59 = vpop.f32.mrf.mxu0 }
 0x186   : > { %v4067_v15 = vpop.f32.mrf.mxu1 }
 0x187   : > { %v4073_v38 = vpop.f32.mrf.mxu0 }
 0x188   : > { %v4071_v11 = vpop.f32.mrf.mxu1 }
 0x189   : > { %v4077_v22 = vpop.f32.mrf.mxu0 }
 0x18a   : > { %v4075_v24 = vpop.f32.mrf.mxu1 }
 0x18b   : > { %v4081_v19 = vpop.f32.mrf.mxu0 }
 0x18c   : > { %v4079_v47 = vpop.f32.mrf.mxu1 }
 0x18d   : > { %v4085_v61 = vpop.f32.mrf.mxu0 }
 0x18e   : > { %v4083_v35 = vpop.f32.mrf.mxu1 }
 0x18f   : > { %v4089_v31 = vpop.f32.mrf.mxu0 }
 0x190   : > { %v4087_v37 = vpop.f32.mrf.mxu1 }
 0x191   : > { %v4093_v23 = vpop.f32.mrf.mxu0 }
 0x192   : > { %v4091_v32 = vpop.f32.mrf.mxu1 }
 0x193   : > { %v4097_v7 = vpop.f32.mrf.mxu0 }
 0x194   : > { %v4095_v48 = vpop.f32.mrf.mxu1 }
 0x195   : > { %v4101_v63 = vpop.f32.mrf.mxu0 }
 0x196   : > { %v4099_v34 = vpop.f32.mrf.mxu1 }
 0x197   : > { %v4105_v16 = vpop.f32.mrf.mxu0 }
 0x198   : > { %v4103_v12 = vpop.f32.mrf.mxu1 }
 0x199   : > { %v4109_v14 = vpop.f32.mrf.mxu0 }
 0x19a   : > { %v4107_v53 = vpop.f32.mrf.mxu1 }
 0x19b   : > { %v4113_v40 = vpop.f32.mrf.mxu0 }
 0x19c   : > { %v4111_v39 = vpop.f32.mrf.mxu1  ;;  %4377 = vst [vmem:[#allocation16_spill] sm:$0xff] %v4113_v40 }
 0x19d   : > { %v4117_v20 = vpop.f32.mrf.mxu0 }
 0x19e   : > { %v4115_v45 = vpop.f32.mrf.mxu1  ;;  %4379 = vst [vmem:[#allocation18_spill] sm:$0xff] %v4117_v20 }
 0x19f   : > { %4378 = vst [vmem:[#allocation17_spill] sm:$0xff] %v4115_v45  ;;  %v4121_v5 = vpop.f32.mrf.mxu0 }
 0x1a0   : > { %v4119_v56 = vpop.f32.mrf.mxu1  ;;  %4381 = vst [vmem:[#allocation20_spill] sm:$0xff] %v4121_v5 }
 0x1a1   : > { %4380 = vst [vmem:[#allocation19_spill] sm:$0xff] %v4119_v56  ;;  %v4125_v62 = vpop.f32.mrf.mxu0 }
 0x1a2   : > { %v4123_v10 = vpop.f32.mrf.mxu1  ;;  %4383 = vst [vmem:[#allocation22_spill] sm:$0xff] %v4125_v62 }
 0x1a3   : > { %4382 = vst [vmem:[#allocation21_spill] sm:$0xff] %v4123_v10  ;;  %v4129_v52 = vpop.f32.mrf.mxu0 }
 0x1a4   : > { %v4127_v17 = vpop.f32.mrf.mxu1  ;;  %4385 = vst [vmem:[#allocation24_spill] sm:$0xff] %v4129_v52 }
 0x1a5   : > { %4384 = vst [vmem:[#allocation23_spill] sm:$0xff] %v4127_v17  ;;  %v4133_v4 = vpop.f32.mrf.mxu0 }
 0x1a6   : > { %v4131_v55 = vpop.f32.mrf.mxu1  ;;  %4387 = vst [vmem:[#allocation26_spill] sm:$0xff] %v4133_v4 }
 0x1a7   : > { %4386 = vst [vmem:[#allocation25_spill] sm:$0xff] %v4131_v55  ;;  %v4137_v45 = vpop.f32.mrf.mxu0 }
 0x1a8   : > { %v4135_v40 = vpop.f32.mrf.mxu1  ;;  %4389 = vst [vmem:[#allocation28_spill] sm:$0xff] %v4137_v45 }
 0x1a9   : > { %4388 = vst [vmem:[#allocation27_spill] sm:$0xff] %v4135_v40  ;;  %v4141_v56 = vpop.f32.mrf.mxu0 }
 0x1aa   : > { %v4139_v20 = vpop.f32.mrf.mxu1  ;;  %4391 = vst [vmem:[#allocation30_spill] sm:$0xff] %v4141_v56 }
 0x1ab   : > { %4390 = vst [vmem:[#allocation29_spill] sm:$0xff] %v4139_v20  ;;  %v4145_v10 = vpop.f32.mrf.mxu0 }
 0x1ac   : > { %v4143_v5 = vpop.f32.mrf.mxu1  ;;  %4393 = vst [vmem:[#allocation32_spill] sm:$0xff] %v4145_v10 }
 0x1ad   : > { %4392 = vst [vmem:[#allocation31_spill] sm:$0xff] %v4143_v5  ;;  %v4149_v52 = vpop.f32.mrf.mxu0  ;;  %v1588_v5 = vadd.f32 %v2910_v21, %v3952_v2  ;;  %v1587_v21 = vadd.f32 %v4055_v8, %v3961_v54 }
 0x1ae   : > { %v4147_v62 = vpop.f32.mrf.mxu1  ;;  %4395 = vst [vmem:[#allocation34_spill] sm:$0xff] %v4149_v52  ;;  %v1586_v52 = vadd.f32 %v1459_v30, %v3955_v36 }
 0x1af   : > { %4394 = vst [vmem:[#allocation33_spill] sm:$0xff] %v4147_v62  ;;  %v4153_v4 = vpop.f32.mrf.mxu0  ;;  %v1895_v54 = vadd.f32 %v4057_v9, %v1587_v21 }
 0x1b0   : > { %v4151_v55 = vpop.f32.mrf.mxu1  ;;  %4397 = vst [vmem:[#allocation36_spill] sm:$0xff] %v4153_v4  ;;  %v1896_v4 = vadd.f32 %v4045_v41, %v1588_v5  ;;  %v1894_v2 = vadd.f32 %v4049_v44, %v1586_v52  ;;  %v1592_v41 = vadd.f32 %v4059_v28, %v3964_v13  ;;  %v1593_v13 = vadd.f32 %v4067_v15, %v3970_v42 }
 0x1b1   : > { %4396 = vst [vmem:[#allocation35_spill] sm:$0xff] %v4151_v55  ;;  %v4157_v45 = vpop.f32.mrf.mxu0  ;;  %v1591_v28 = vadd.f32 %v4071_v11, %v3973_v25 }
 0x1b2   : > { %v4155_v40 = vpop.f32.mrf.mxu1  ;;  %4398 = vst [vmem:[#allocation37_spill] sm:$0xff] %v4157_v45  ;;  %v1589_v45 = vadd.f32 %v4051_v6, %v3958_v43  ;;  %v1901_v42 = vadd.f32 %v4069_v59, %v1593_v13 }
 0x1b3   : > { %v4161_v56 = vpop.f32.mrf.mxu0  ;;  %v1899_v25 = vadd.f32 %v4073_v38, %v1591_v28 }
 0x1b4   : > { %v4159_v20 = vpop.f32.mrf.mxu1  ;;  %4400 = vst [vmem:[#allocation39_spill] sm:$0xff] %v4161_v56  ;;  %v1897_v43 = vadd.f32 %v4053_v60, %v1589_v45  ;;  %v1900_v45 = vadd.f32 %v4061_v18, %v1592_v41 }
 0x1b5   : > { %4399 = vst [vmem:[#allocation38_spill] sm:$0xff] %v4159_v20  ;;  %v4166_v62 = vpop.f32.mrf.mxu0 }
 0x1b6   : > { %v4164_v10 = vpop.f32.mrf.mxu1  ;;  %4401 = vst [vmem:[#allocation40_spill] sm:$0xff] %v4166_v62 }
 0x1b7   : > { %v4171_v55 = vpop.f32.mrf.mxu0 }
 0x1b8   : > { %v4169_v17 = vpop.f32.mrf.mxu1  ;;  %4403 = vst [vmem:[#allocation42_spill] sm:$0xff] %v4171_v55 }
 0x1b9   : > { %4402 = vst [vmem:[#allocation41_spill] sm:$0xff] %v4169_v17  ;;  %v3012_v56 = vpop.f32.mrf.mxu0 }
 0x1ba   : > { %v2978_v20 = vpop.f32.mrf.mxu1 }
 0x1bb   : > { %v2099_v62 = vadd.f32 %v2978_v20, %v1896_v4  ;;  %v2166_v5 = vpop.f32.mrf.mxu0  ;;  %v1590_v4 = vadd.f32 %v4063_v27, %v3967_v1 }
 0x1bc   : > { %v1970_v36 = vpop.f32.mrf.mxu1 }
 0x1bd   : > { %v2295_v30 = vadd.f32 %v3012_v56, %v2099_v62  ;;  %v2097_v52 = vadd.f32 %v1970_v36, %v1894_v2  ;;  %v3013_v6 = vpop.f32.mrf.mxu0  ;;  %v1898_v1 = vadd.f32 %v4065_v50, %v1590_v4 }
 0x1be   : > { %v2979_v44 = vpop.f32.mrf.mxu1 }
 0x1bf   : > { %2327 = vst.msk [vmem:[%s4183_s28 + $0x10] sm:$0xff] %vm413_vm3, %v2295_v30  ;;  %v2293_v20 = vadd.f32 %v2166_v5, %v2097_v52  ;;  %v2100_v8 = vadd.f32 %v2979_v44, %v1897_v43  ;;  %v2169_v17 = vpop.f32.mrf.mxu0 }
 0x1c0   : > { %v1973_v55 = vpop.f32.mrf.mxu1 }
 0x1c1   : > { %2325 = vst.msk [vmem:[%s4183_s28] sm:$0xff] %vm413_vm3, %v2293_v20  ;;  %v2296_v62 = vadd.f32 %v3013_v6, %v2100_v8  ;;  %v2098_v56 = vadd.f32 %v1973_v55, %v1895_v54  ;;  %v3016_v9 = vpop.f32.mrf.mxu0  ;;  %v1596_v55 = vadd.f32 %v4075_v24, %v3976_v29  ;;  %v1597_v24 = vadd.f32 %v4083_v35, %v3982_v33 }
 0x1c2   : > { %v2982_v60 = vpop.f32.mrf.mxu1  ;;  %v1600_v35 = vadd.f32 %v4091_v32, %v3988_v51  ;;  %v1601_v32 = vadd.f32 %v4099_v34, %v3994_v3  ;;  %v1604_v34 = vadd.f32 %v4107_v53, %v4000_v49  ;;  %v4404_v53 = vld [vmem:[#allocation2_spill] sm:$0xff] }
 0x1c3   : > { %2328 = vst.msk [vmem:[%s4183_s28 + $0x18] sm:$0xff] %vm413_vm3, %v2296_v62  ;;  %v2294_v27 = vadd.f32 %v2169_v17, %v2098_v56  ;;  %v2103_v18 = vadd.f32 %v2982_v60, %v1900_v45  ;;  %v2182_v21 = vpop.f32.mrf.mxu0  ;;  %v1594_v17 = vadd.f32 %v4079_v47, %v3979_v46  ;;  %v1904_v29 = vadd.f32 %v4077_v22, %v1596_v55 }
 0x1c4   : > { %v1986_v2 = vpop.f32.mrf.mxu1  ;;  %v1595_v47 = vadd.f32 %v4087_v37, %v3985_v0  ;;  %v1905_v33 = vadd.f32 %v4085_v61, %v1597_v24  ;;  %v1598_v37 = vadd.f32 %v4095_v48, %v3991_v26  ;;  %v1908_v51 = vadd.f32 %v4093_v23, %v1600_v35 }
 0x1c5   : > { %2326 = vst.msk [vmem:[%s4183_s28 + $0x8] sm:$0xff] %vm413_vm3, %v2294_v27  ;;  %v2299_v15 = vadd.f32 %v3016_v9, %v2103_v18  ;;  %v2101_v50 = vadd.f32 %v1986_v2, %v1898_v1  ;;  %v3017_v5 = vpop.f32.mrf.mxu0  ;;  %v1902_v46 = vadd.f32 %v4081_v19, %v1594_v17  ;;  %v1599_v48 = vadd.f32 %v4103_v12, %v3997_v58 }
 0x1c6   : > { %v2983_v36 = vpop.f32.mrf.mxu1  ;;  %v1903_v0 = vadd.f32 %v4089_v31, %v1595_v47  ;;  %v1906_v26 = vadd.f32 %v4097_v7, %v1598_v37  ;;  %v1909_v3 = vadd.f32 %v4101_v63, %v1601_v32  ;;  %v1602_v12 = vadd.f32 %v4111_v39, %v4003_v57  ;;  %v4407_v39 = vld [vmem:[#allocation3_spill] sm:$0xff] }
 0x1c7   : > { %2331 = vst.msk [vmem:[%s4183_s28 + $0x30] sm:$0xff] %vm413_vm3, %v2299_v15  ;;  %v2297_v11 = vadd.f32 %v2182_v21, %v2101_v50  ;;  %v2104_v59 = vadd.f32 %v2983_v36, %v1901_v42  ;;  %v2185_v41 = vpop.f32.mrf.mxu0  ;;  %v1907_v58 = vadd.f32 %v4105_v16, %v1599_v48  ;;  %v1912_v49 = vadd.f32 %v4109_v14, %v1604_v34  ;;  %v4405_v36 = vld [vmem:[#allocation17_spill] sm:$0xff] }
 0x1c8   : > { %v1989_v43 = vpop.f32.mrf.mxu1 }
 0x1c9   : > { %2329 = vst.msk [vmem:[%s4183_s28 + $0x20] sm:$0xff] %vm413_vm3, %v2297_v11  ;;  %v2300_v30 = vadd.f32 %v3017_v5, %v2104_v59  ;;  %v2102_v38 = vadd.f32 %v1989_v43, %v1899_v25  ;;  %v3020_v44 = vpop.f32.mrf.mxu0  ;;  %v1605_v5 = vadd.f32 %v4405_v36, %v4404_v53  ;;  %v4406_v59 = vld [vmem:[#allocation16_spill] sm:$0xff]  ;;  %v4408_v43 = vld [vmem:[#allocation19_spill] sm:$0xff]  ;;  %v4425_v36 = vld [vmem:[#allocation9_spill] sm:$0xff] }
 0x1ca   : > { %v2986_v52 = vpop.f32.mrf.mxu1  ;;  %v1910_v57 = vadd.f32 %v4406_v59, %v1602_v12 }
 0x1cb   : > { %2332 = vst.msk [vmem:[%s4183_s28 + $0x38] sm:$0xff] %vm413_vm3, %v2300_v30  ;;  %v2298_v6 = vadd.f32 %v2185_v41, %v2102_v38  ;;  %v2107_v22 = vadd.f32 %v2986_v52, %v1904_v29  ;;  %v2198_v4 = vpop.f32.mrf.mxu0  ;;  %v1603_v41 = vadd.f32 %v4408_v43, %v4407_v39  ;;  %v4409_v38 = vld [vmem:[#allocation18_spill] sm:$0xff] }
 0x1cc   : > { %v2002_v54 = vpop.f32.mrf.mxu1  ;;  %v1913_v52 = vadd.f32 %v4409_v38, %v1605_v5  ;;  %v4426_v5 = vld [vmem:[#allocation31_spill] sm:$0xff]  ;;  %v4428_v43 = vld [vmem:[#allocation10_spill] sm:$0xff] }
 0x1cd   : > { %2330 = vst.msk [vmem:[%s4183_s28 + $0x28] sm:$0xff] %vm413_vm3, %v2298_v6  ;;  %v2303_v20 = vadd.f32 %v3020_v44, %v2107_v22  ;;  %v2105_v19 = vadd.f32 %v2002_v54, %v1902_v46  ;;  %v3021_v45 = vpop.f32.mrf.mxu0  ;;  %v4410_v44 = vld [vmem:[#allocation4_spill] sm:$0xff]  ;;  %v4411_v46 = vld [vmem:[#allocation21_spill] sm:$0xff] }
 0x1ce   : > { %v2987_v8 = vpop.f32.mrf.mxu1  ;;  %v1608_v47 = vadd.f32 %v4411_v46, %v4410_v44  ;;  %v4431_v46 = vld [vmem:[#allocation11_spill] sm:$0xff] }
 0x1cf   : > { %2335 = vst.msk [vmem:[%s4183_s28 + $0x50] sm:$0xff] %vm413_vm3, %v2303_v20  ;;  %v2301_v13 = vadd.f32 %v2198_v4, %v2105_v19  ;;  %v2108_v61 = vadd.f32 %v2987_v8, %v1905_v33  ;;  %v2201_v56 = vpop.f32.mrf.mxu0  ;;  %v4412_v33 = vld [vmem:[#allocation20_spill] sm:$0xff]  ;;  %v4413_v20 = vld [vmem:[#allocation5_spill] sm:$0xff]  ;;  %v4414_v19 = vld [vmem:[#allocation23_spill] sm:$0xff] }
 0x1d0   : > { %v2005_v62 = vpop.f32.mrf.mxu1  ;;  %v1911_v35 = vadd.f32 %v4412_v33, %v1603_v41  ;;  %v1606_v8 = vadd.f32 %v4414_v19, %v4413_v20  ;;  %v4429_v41 = vld [vmem:[#allocation33_spill] sm:$0xff]  ;;  %v4434_v19 = vld [vmem:[#allocation12_spill] sm:$0xff] }
 0x1d1   : > { %2333 = vst.msk [vmem:[%s4183_s28 + $0x40] sm:$0xff] %vm413_vm3, %v2301_v13  ;;  %v2304_v60 = vadd.f32 %v3021_v45, %v2108_v61  ;;  %v2106_v31 = vadd.f32 %v2005_v62, %v1903_v0  ;;  %v3024_v1 = vpop.f32.mrf.mxu0  ;;  %v4415_v61 = vld [vmem:[#allocation22_spill] sm:$0xff] }
 0x1d2   : > { %v2990_v9 = vpop.f32.mrf.mxu1  ;;  %v1916_v62 = vadd.f32 %v4415_v61, %v1608_v47  ;;  %v4432_v47 = vld [vmem:[#allocation35_spill] sm:$0xff]  ;;  %v4435_v61 = vld [vmem:[#allocation36_spill] sm:$0xff] }
 0x1d3   : > { %2336 = vst.msk [vmem:[%s4183_s28 + $0x58] sm:$0xff] %vm413_vm3, %v2304_v60  ;;  %v2302_v28 = vadd.f32 %v2201_v56, %v2106_v31  ;;  %v2111_v23 = vadd.f32 %v2990_v9, %v1908_v51  ;;  %v2214_v18 = vpop.f32.mrf.mxu0  ;;  %v4416_v56 = vld [vmem:[#allocation6_spill] sm:$0xff]  ;;  %v4417_v51 = vld [vmem:[#allocation25_spill] sm:$0xff] }
 0x1d4   : > { %v2018_v27 = vpop.f32.mrf.mxu1  ;;  %v1609_v32 = vadd.f32 %v4417_v51, %v4416_v56  ;;  %v4436_v56 = vld [vmem:[#allocation13_spill] sm:$0xff]  ;;  %v4437_v51 = vld [vmem:[#allocation38_spill] sm:$0xff] }
 0x1d5   : > { %2334 = vst.msk [vmem:[%s4183_s28 + $0x48] sm:$0xff] %vm413_vm3, %v2302_v28  ;;  %v2307_v2 = vadd.f32 %v3024_v1, %v2111_v23  ;;  %v2109_v7 = vadd.f32 %v2018_v27, %v1906_v26  ;;  %v3025_v42 = vpop.f32.mrf.mxu0  ;;  %v4418_v26 = vld [vmem:[#allocation24_spill] sm:$0xff]  ;;  %v4419_v28 = vld [vmem:[#allocation7_spill] sm:$0xff] }
 0x1d6   : > { %v2991_v21 = vpop.f32.mrf.mxu1  ;;  %v1914_v48 = vadd.f32 %v4418_v26, %v1606_v8  ;;  %v4420_v23 = vld [vmem:[#allocation27_spill] sm:$0xff]  ;;  %v1616_v8 = vadd.f32 %v4155_v40, %v4434_v19  ;;  %v4438_v26 = vld [vmem:[#allocation37_spill] sm:$0xff] }
 0x1d7   : > { %2339 = vst.msk [vmem:[%s4183_s28 + $0x70] sm:$0xff] %vm413_vm3, %v2307_v2  ;;  %v2305_v55 = vadd.f32 %v2214_v18, %v2109_v7  ;;  %v2112_v63 = vadd.f32 %v2991_v21, %v1909_v3  ;;  %v2217_v50 = vpop.f32.mrf.mxu0  ;;  %v1607_v27 = vadd.f32 %v4420_v23, %v4419_v28  ;;  %v4421_v7 = vld [vmem:[#allocation26_spill] sm:$0xff] }
 0x1d8   : > { %v2021_v15 = vpop.f32.mrf.mxu1  ;;  %v1917_v21 = vadd.f32 %v4421_v7, %v1609_v32  ;;  %v1614_v32 = vadd.f32 %v4437_v51, %v4436_v56  ;;  %v1924_v40 = vadd.f32 %v4438_v26, %v1616_v8  ;;  %v4441_v7 = vld [vmem:[#allocation15_spill] sm:$0xff] }
 0x1d9   : > { %2337 = vst.msk [vmem:[%s4183_s28 + $0x60] sm:$0xff] %vm413_vm3, %v2305_v55  ;;  %v2308_v25 = vadd.f32 %v3025_v42, %v2112_v63  ;;  %v2110_v16 = vadd.f32 %v2021_v15, %v1907_v58  ;;  %v3028_v11 = vpop.f32.mrf.mxu0  ;;  %v4422_v42 = vld [vmem:[#allocation8_spill] sm:$0xff]  ;;  %v4423_v58 = vld [vmem:[#allocation29_spill] sm:$0xff] }
 0x1da   : > { %v2994_v17 = vpop.f32.mrf.mxu1  ;;  %v1612_v12 = vadd.f32 %v4423_v58, %v4422_v42 }
 0x1db   : > { %2340 = vst.msk [vmem:[%s4183_s28 + $0x78] sm:$0xff] %vm413_vm3, %v2308_v25  ;;  %v2306_v29 = vadd.f32 %v2217_v50, %v2110_v16  ;;  %v2115_v14 = vadd.f32 %v2994_v17, %v1912_v49  ;;  %v2230_v30 = vpop.f32.mrf.mxu0  ;;  %v4424_v49 = vld [vmem:[#allocation28_spill] sm:$0xff]  ;;  %v1610_v25 = vadd.f32 %v4426_v5, %v4425_v36  ;;  %v4444_v5 = vld [vmem:[#allocation42_spill] sm:$0xff] }
 0x1dc   : > { %v2034_v24 = vpop.f32.mrf.mxu1  ;;  %v1915_v53 = vadd.f32 %v4424_v49, %v1607_v27 }
 0x1dd   : > { %2338 = vst.msk [vmem:[%s4183_s28 + $0x68] sm:$0xff] %vm413_vm3, %v2306_v29  ;;  %v2311_v6 = vadd.f32 %v3028_v11, %v2115_v14  ;;  %v2113_v22 = vadd.f32 %v2034_v24, %v1910_v57  ;;  %v3029_v4 = vpop.f32.mrf.mxu0  ;;  %v4427_v57 = vld [vmem:[#allocation30_spill] sm:$0xff]  ;;  %v1613_v29 = vadd.f32 %v4429_v41, %v4428_v43 }
 0x1de   : > { %v2995_v54 = vpop.f32.mrf.mxu1  ;;  %v1920_v39 = vadd.f32 %v4427_v57, %v1612_v12 }
 0x1df   : > { %2343 = vst.msk [vmem:[%s4183_s28 + $0x90] sm:$0xff] %vm413_vm3, %v2311_v6  ;;  %v2309_v45 = vadd.f32 %v2230_v30, %v2113_v22  ;;  %v2116_v0 = vadd.f32 %v2995_v54, %v1913_v52  ;;  %v2233_v13 = vpop.f32.mrf.mxu0  ;;  %v4430_v52 = vld [vmem:[#allocation32_spill] sm:$0xff]  ;;  %v1611_v6 = vadd.f32 %v4432_v47, %v4431_v46 }
 0x1e0   : > { %v2037_v37 = vpop.f32.mrf.mxu1  ;;  %v1918_v44 = vadd.f32 %v4430_v52, %v1610_v25 }
 0x1e1   : > { %2341 = vst.msk [vmem:[%s4183_s28 + $0x80] sm:$0xff] %vm413_vm3, %v2309_v45  ;;  %v2312_v60 = vadd.f32 %v3029_v4, %v2116_v0  ;;  %v2114_v31 = vadd.f32 %v2037_v37, %v1911_v35  ;;  %v3032_v1 = vpop.f32.mrf.mxu0  ;;  %v4433_v35 = vld [vmem:[#allocation34_spill] sm:$0xff] }
 0x1e2   : > { %v2998_v9 = vpop.f32.mrf.mxu1  ;;  %v1921_v20 = vadd.f32 %v4433_v35, %v1613_v29 }
 0x1e3   : > { %2344 = vst.msk [vmem:[%s4183_s28 + $0x98] sm:$0xff] %vm413_vm3, %v2312_v60  ;;  %v2310_v18 = vadd.f32 %v2233_v13, %v2114_v31  ;;  %v2119_v3 = vadd.f32 %v2998_v9, %v1916_v62  ;;  %v2246_v2 = vpop.f32.mrf.mxu0  ;;  %v1919_v62 = vadd.f32 %v4435_v61, %v1611_v6 }
 0x1e4   : > { %v2050_v34 = vpop.f32.mrf.mxu1 }
 0x1e5   : > { %2342 = vst.msk [vmem:[%s4183_s28 + $0x88] sm:$0xff] %vm413_vm3, %v2310_v18  ;;  %v2315_v55 = vadd.f32 %v3032_v1, %v2119_v3  ;;  %v2117_v63 = vadd.f32 %v2050_v34, %v1914_v48  ;;  %v3033_v50 = vpop.f32.mrf.mxu0  ;;  %v4439_v48 = vld [vmem:[#allocation14_spill] sm:$0xff]  ;;  %v4440_v34 = vld [vmem:[#allocation39_spill] sm:$0xff] }
 0x1e6   : > { %v2999_v15 = vpop.f32.mrf.mxu1  ;;  %v1617_v28 = vadd.f32 %v4164_v10, %v4439_v48  ;;  %v4443_v10 = vld [vmem:[#allocation40_spill] sm:$0xff] }
 0x1e7   : > { %2347 = vst.msk [vmem:[%s4183_s28 + $0xb0] sm:$0xff] %vm413_vm3, %v2315_v55  ;;  %v2313_v16 = vadd.f32 %v2246_v2, %v2117_v63  ;;  %v2120_v17 = vadd.f32 %v2999_v15, %v1917_v21  ;;  %v2249_v59 = vpop.f32.mrf.mxu0  ;;  %v1922_v2 = vadd.f32 %v4440_v34, %v1614_v32  ;;  %v4442_v21 = vld [vmem:[#allocation41_spill] sm:$0xff] }
 0x1e8   : > { %v2053_v11 = vpop.f32.mrf.mxu1  ;;  %v1615_v42 = vadd.f32 %v4442_v21, %v4441_v7  ;;  %v1925_v15 = vadd.f32 %v4443_v10, %v1617_v28 }
 0x1e9   : > { %2345 = vst.msk [vmem:[%s4183_s28 + $0xa0] sm:$0xff] %vm413_vm3, %v2313_v16  ;;  %v2316_v14 = vadd.f32 %v3033_v50, %v2120_v17  ;;  %v2118_v24 = vadd.f32 %v2053_v11, %v1915_v53  ;;  %v3036_v38 = vpop.f32.mrf.mxu0 }
 0x1ea   : > { %v3002_v30 = vpop.f32.mrf.mxu1  ;;  %v1923_v25 = vadd.f32 %v4444_v5, %v1615_v42 }
 0x1eb   : > { %2348 = vst.msk [vmem:[%s4183_s28 + $0xb8] sm:$0xff] %vm413_vm3, %v2316_v14  ;;  %v2314_v22 = vadd.f32 %v2249_v59, %v2118_v24  ;;  %v2123_v54 = vadd.f32 %v3002_v30, %v1920_v39  ;;  %v2262_v33 = vpop.f32.mrf.mxu0 }
 0x1ec   : > { %v2066_v4 = vpop.f32.mrf.mxu1 }
 0x1ed   : > { %2346 = vst.msk [vmem:[%s4183_s28 + $0xa8] sm:$0xff] %vm413_vm3, %v2314_v22  ;;  %v2319_v45 = vadd.f32 %v3036_v38, %v2123_v54  ;;  %v2121_v0 = vadd.f32 %v2066_v4, %v1918_v44  ;;  %v3037_v13 = vpop.f32.mrf.mxu0 }
 0x1ee   : > { %v3003_v37 = vpop.f32.mrf.mxu1 }
 0x1ef   : > { %2351 = vst.msk [vmem:[%s4183_s28 + $0xd0] sm:$0xff] %vm413_vm3, %v2319_v45  ;;  %v2317_v60 = vadd.f32 %v2262_v33, %v2121_v0  ;;  %v2124_v31 = vadd.f32 %v3003_v37, %v1921_v20  ;;  %v2265_v1 = vpop.f32.mrf.mxu0 }
 0x1f0   : > { %v2069_v9 = vpop.f32.mrf.mxu1 }
 0x1f1   : > { %2349 = vst.msk [vmem:[%s4183_s28 + $0xc0] sm:$0xff] %vm413_vm3, %v2317_v60  ;;  %v2320_v23 = vadd.f32 %v3037_v13, %v2124_v31  ;;  %v2122_v27 = vadd.f32 %v2069_v9, %v1919_v62  ;;  %v3040_v3 = vpop.f32.mrf.mxu0 }
 0x1f2   : > { %v3006_v18 = vpop.f32.mrf.mxu1 }
 0x1f3   : > { %2352 = vst.msk [vmem:[%s4183_s28 + $0xd8] sm:$0xff] %vm413_vm3, %v2320_v23  ;;  %v2318_v58 = vadd.f32 %v2265_v1, %v2122_v27  ;;  %v2127_v12 = vadd.f32 %v3006_v18, %v1924_v40  ;;  %v2278_v63 = vpop.f32.mrf.mxu0 }
 0x1f4   : > { %v2082_v55 = vpop.f32.mrf.mxu1 }
 0x1f5   : > { %2350 = vst.msk [vmem:[%s4183_s28 + $0xc8] sm:$0xff] %vm413_vm3, %v2318_v58  ;;  %v2323_v50 = vadd.f32 %v3040_v3, %v2127_v12  ;;  %v2125_v49 = vadd.f32 %v2082_v55, %v1922_v2  ;;  %v3041_v36 = vpop.f32.mrf.mxu0 }
 0x1f6   : > { %v3007_v53 = vpop.f32.mrf.mxu1 }
 0x1f7   : > { %2355 = vst.msk [vmem:[%s4183_s28 + $0xf0] sm:$0xff] %vm413_vm3, %v2323_v50  ;;  %v2321_v16 = vadd.f32 %v2278_v63, %v2125_v49  ;;  %v2128_v17 = vadd.f32 %v3007_v53, %v1925_v15  ;;  %v2281_v39 = vpop.f32.mrf.mxu0 }
 0x1f8   : > { %v2085_v11 = vpop.f32.mrf.mxu1 }
 0x1f9   : > { %2353 = vst.msk [vmem:[%s4183_s28 + $0xe0] sm:$0xff] %vm413_vm3, %v2321_v16  ;;  %v2324_v59 = vadd.f32 %v3041_v36, %v2128_v17  ;;  %v2126_v57 = vadd.f32 %v2085_v11, %v1923_v25 }
 0x1fb   : > { %2356 = vst.msk [vmem:[%s4183_s28 + $0xf8] sm:$0xff] %vm413_vm3, %v2324_v59  ;;  %v2322_v43 = vadd.f32 %v2281_v39, %v2126_v57 }
 0x1fd   : > { %2354 = vst.msk [vmem:[%s4183_s28 + $0xe8] sm:$0xff] %vm413_vm3, %v2322_v43 }
 0x1fe PF: > { %s12_s9 = sadd.s32 1, %s3089_s9  }
 0x1ff   : > { %p9_p4 = scmp.ge.s32.totalorder %s12_s9, 4  }
 0x201   :  { %11 = sbr.rel (!%p9_p4) target bundleno = 1 (0x1), region = 58 }

</bundles_post_ra>
